<compile_context>
chip_gen: v7x
topology: tpu7x:2x2x1
jax: 0.10.0
libtpu: 0.0.40
codegen_flags: <defaults>
</compile_context>

<pallas_src>
import functools

import jax
import jax.numpy as jnp
from jax.experimental import pallas as pl
from jax.experimental.pallas import tpu as pltpu


def _round_up(a, b):
    return (a + b - 1) // b * b


def vfe_kernel(x_ref, w_ref, shift_ref, out_ref, *, cout):
    """One tile of voxels.

    x_ref:     (tile_n, M*Cin)    f32 lane-dense point features
    w_ref:     (M*Cin, M*2*Cout)  bf16 block-diagonal weight (BN scale folded in,
                                  columns in output order: [pw_m | zeros] per point)
    shift_ref: (1, M*2*Cout)      f32 folded BN shift ([shift | zeros] per point)
    out_ref:   (tile_n, M*2*Cout) lane-dense [pointwise_m | aggregated] per point
    """
    w2 = 2 * cout                     # per-point output width (divides 128)
    rows = out_ref.shape[0]
    width = out_ref.shape[1]          # M * 2 * Cout, multiple of 128
    n_grp = width // 128

    # Linear (+ folded BN scale) for all M points in one lane-dense bf16 MXU matmul.
    # Pointwise features land directly at their final lane offsets; the "agg"
    # column slots come out as exact zeros (zero weight columns).
    y = jnp.dot(x_ref[...].astype(jnp.bfloat16), w_ref[...],
                preferred_element_type=jnp.float32)
    # Folded BN shift (zero in the agg slots) + ReLU.
    y = jnp.maximum(y + shift_ref[...], 0.0)                      # (rows, width)

    # Max over the M points of each voxel using only 128-lane-aligned vreg maxes.
    r = y[:, 0:128]
    for g in range(1, n_grp):
        r = jnp.maximum(r, y[:, g * 128:(g + 1) * 128])
    # Butterfly max across the 128//w2 point-segments inside one 128-lane vector
    # (XLU rolls; shifts are half-periods, so the roll direction does not matter).
    s = 64
    while s >= w2:
        r = jnp.maximum(r, pltpu.roll(r, shift=s, axis=1))
        s //= 2
    # Lane p of r now holds agg[p % w2] wherever (p % w2) < cout.  One more
    # half-period roll drops agg[c] onto lanes with (p % w2) == cout + c, i.e.
    # exactly the per-point "aggregated" slots of the output layout.
    agg = pltpu.roll(r, shift=cout, axis=1)

    lane = jax.lax.broadcasted_iota(jnp.int32, (rows, 128), 1)
    take_agg = (lane % w2) >= cout
    # Direct, 128-lane-aligned stores into out_ref (no concatenated temporary).
    for g in range(n_grp):
        blk = jnp.where(take_agg, agg, y[:, g * 128:(g + 1) * 128])
        out_ref[:, g * 128:(g + 1) * 128] = blk.astype(out_ref.dtype)


def vfe_layer(inputs, weight, bn_gamma, bn_beta, bn_mean, bn_var,
              eps=1e-3, tile_n=1024, out_dtype=jnp.float32):
    """VFELayer forward (max_out=True, cat_max=True, eval-mode BatchNorm1d).

    inputs: (N, M, Cin) float32.  weight: (Cout, Cin) as in nn.Linear(bias=False).
    Returns (N, M, 2*Cout) in out_dtype (float32 by default, matching the module).
    """
    N, M, Cin = inputs.shape
    Cout = weight.shape[0]
    w2 = 2 * Cout
    width = M * w2

    # TODO(synk): fast path assumes 2*Cout divides 128 and M*2*Cout is a multiple
    # of 128 (true for PointPillars-style configs, Cout in {16, 32, 64}); other
    # shapes need a masked/generic assembly path.
    assert 128 % w2 == 0, f"2*out_channels={w2} must divide 128"
    assert width % 128 == 0, f"M*2*Cout={width} must be a multiple of 128"

    f32 = jnp.float32
    # Fold eval-mode BN1d into the Linear weight (scale) and a bias (shift).
    scale = (bn_gamma / jnp.sqrt(bn_var + eps)).astype(f32)            # (Cout,)
    shift = (bn_beta - bn_mean * scale).astype(f32)                    # (Cout,)
    w_fold = weight.T.astype(f32) * scale[None, :]                     # (Cin, Cout)

    # Per-point block in *output* column order: [pw columns | zero "agg" columns].
    w_point = jnp.concatenate([w_fold, jnp.zeros((Cin, Cout), f32)], axis=1)
    # Block-diagonal wide weight: one (tile_n, M*Cin) @ (M*Cin, M*2*Cout) matmul
    # applies the Linear to all M points with lane-dense operands and results.
    w_bd = jnp.kron(jnp.eye(M, dtype=f32), w_point).astype(jnp.bfloat16)
    shift_flat = jnp.tile(jnp.concatenate([shift, jnp.zeros((Cout,), f32)]),
                          M).reshape(1, width)

    # Lane-dense input layout (row-major-compatible, metadata-only reshape).
    x_flat = inputs.reshape(N, M * Cin).astype(f32)

    # Voxel-axis tiling: multiple of 8 sublanes, big enough to amortize the
    # ~0.35us/step pipeline overhead, capped so the grid keeps >=2 steps whenever
    # N allows (so both v7x TensorCores get work via the "parallel" dimension).
    tile_n = max(8, min(int(tile_n), 2048))
    tile_n -= tile_n % 8
    tile_n = min(tile_n, _round_up(max(-(-N // 2), 8), 8))
    n_pad = _round_up(N, tile_n)
    if n_pad != N:
        x_flat = jnp.pad(x_flat, ((0, n_pad - N), (0, 0)))

    # VMEM budget computed from the actual working set (double-buffered I/O +
    # matmul result), clamped to what is safe on every generation (v7x has only
    # 64 MiB of physical VMEM per TensorCore).
    out_itemsize = jnp.dtype(out_dtype).itemsize
    working = (
        2 * (tile_n * M * Cin * 4                # double-buffered x tiles (f32)
             + tile_n * width * out_itemsize     # double-buffered out tiles
             + M * Cin * width * 2               # bf16 weight
             + width * 4)                        # shift row
        + tile_n * width * 4                     # f32 matmul result / relu temp
        + tile_n * M * Cin * 2                   # bf16 cast of the x tile
        + tile_n * 128 * 4 * 4                   # agg / mask / roll scratch
    )
    vmem_limit = int(min(64 * 1024 * 1024,
                         max(32 * 1024 * 1024, int(working * 1.25))))

    out_flat = pl.pallas_call(
        functools.partial(vfe_kernel, cout=Cout),
        out_shape=jax.ShapeDtypeStruct((n_pad, width), out_dtype),
        grid_spec=pltpu.PrefetchScalarGridSpec(
            num_scalar_prefetch=0,
            grid=(n_pad // tile_n,),
            in_specs=[
                pl.BlockSpec((tile_n, M * Cin), lambda i: (i, 0)),
                pl.BlockSpec((M * Cin, width), lambda i: (0, 0)),
                pl.BlockSpec((1, width), lambda i: (0, 0)),
            ],
            out_specs=pl.BlockSpec((tile_n, width), lambda i: (i, 0)),
        ),
        compiler_params=pltpu.CompilerParams(
            dimension_semantics=("parallel",),
            vmem_limit_bytes=vmem_limit,
        ),
    )(x_flat, w_bd, shift_flat)

    return out_flat[:N].reshape(N, M, w2)


def vfe_layer_ref(inputs, weight, bn_gamma, bn_beta, bn_mean, bn_var, eps=1e-3):
    """Pure-f32 reference mirroring the PyTorch forward (eval-mode BN)."""
    x = jnp.einsum("nmc,kc->nmk", inputs, weight,
                   precision=jax.lax.Precision.HIGHEST)
    x = (x - bn_mean) / jnp.sqrt(bn_var + eps) * bn_gamma + bn_beta
    pointwise = jax.nn.relu(x)
    aggregated = jnp.max(pointwise, axis=1, keepdims=True)
    return jnp.concatenate(
        [pointwise, jnp.broadcast_to(aggregated, pointwise.shape)], axis=-1)


def vfe_layer_ref_kernel_math(inputs, weight, bn_gamma, bn_beta, bn_mean, bn_var,
                              eps=1e-3):
    """Reference using the kernel's exact arithmetic (folded BN, bf16 MXU operands,
    f32 accumulation) -- tight check of the kernel plumbing / lane placement."""
    scale = bn_gamma / jnp.sqrt(bn_var + eps)
    shift = bn_beta - bn_mean * scale
    w_fold = (weight.T.astype(jnp.float32) * scale[None, :]).astype(jnp.bfloat16)
    x = jnp.einsum("nmc,ck->nmk", inputs.astype(jnp.bfloat16), w_fold,
                   preferred_element_type=jnp.float32)
    pointwise = jax.nn.relu(x + shift)
    aggregated = jnp.max(pointwise, axis=1, keepdims=True)
    return jnp.concatenate(
        [pointwise, jnp.broadcast_to(aggregated, pointwise.shape)], axis=-1)


if __name__ == "__main__":
    # Small shapes consistent with (N voxels, M points per voxel, C channels).
    N, M, Cin, Cout = 200, 16, 16, 32

    key = jax.random.PRNGKey(0)
    k_x, k_w, k_g, k_b, k_m, k_v = jax.random.split(key, 6)

    inputs = jax.random.normal(k_x, (N, M, Cin), dtype=jnp.float32)
    # nn.Linear(Cin, Cout, bias=False) + BatchNorm1d(Cout, eps=1e-3) eval params.
    weight = 0.1 * jax.random.normal(k_w, (Cout, Cin), dtype=jnp.float32)
    bn_gamma = 1.0 + 0.05 * jax.random.normal(k_g, (Cout,), dtype=jnp.float32)
    bn_beta = 0.05 * jax.random.normal(k_b, (Cout,), dtype=jnp.float32)
    bn_mean = 0.02 * jax.random.normal(k_m, (Cout,), dtype=jnp.float32)
    bn_var = 0.5 + jax.random.uniform(k_v, (Cout,), dtype=jnp.float32)

    out = vfe_layer(inputs, weight, bn_gamma, bn_beta, bn_mean, bn_var)
    out = jax.block_until_ready(out)
    assert out.shape == (N, M, 2 * Cout)
    assert out.dtype == jnp.float32

    # Tight check: same arithmetic as the kernel (catches any layout/plumbing bug).
    ref_tight = vfe_layer_ref_kernel_math(inputs, weight, bn_gamma, bn_beta,
                                          bn_mean, bn_var)
    err_tight = float(jnp.max(jnp.abs(out - ref_tight)))
    assert err_tight < 1e-4, f"kernel-math mismatch: max abs err {err_tight}"

    # Loose check vs pure-f32 math; the difference is the bf16 rounding of the MXU
    # operands (which TPU default matmul precision applies to f32 inputs anyway).
    ref_f32 = vfe_layer_ref(inputs, weight, bn_gamma, bn_beta, bn_mean, bn_var)
    err_f32 = float(jnp.max(jnp.abs(out - ref_f32)))
    assert err_f32 < 5e-2, f"f32-reference mismatch too large: {err_f32}"

    print("KERNEL_OK")
</pallas_src>

<mosaic_0001>
module attributes {stable_mosaic.version = 11 : i64} {
  func.func @vfe_kernel(%arg0: i32, %arg1: memref<104x256xf32, #tpu.memory_space<vmem>>, %arg2: memref<256x1024xbf16, #tpu.memory_space<vmem>>, %arg3: memref<1x1024xf32, #tpu.memory_space<vmem>>, %arg4: memref<104x1024xf32, #tpu.memory_space<vmem>>) attributes {dimension_semantics = [#tpu.dimension_semantics<parallel>], iteration_bounds = array<i64: 2>, scalar_prefetch = 0 : i64, scratch_operands = 0 : i64, tpu.core_type = #tpu.core_type<tc>, window_params = [{transform_indices = @transform_0, window_bounds = array<i64: 104, 256>}, {pipeline_mode = #tpu.pipeline_mode<synchronous>, transform_indices = @transform_1, window_bounds = array<i64: 256, 1024>}, {pipeline_mode = #tpu.pipeline_mode<synchronous>, transform_indices = @transform_2, window_bounds = array<i64: 1, 1024>}, {transform_indices = @transform_3, window_bounds = array<i64: 104, 1024>}]} {
    %c0 = arith.constant 0 : index
    %c0_0 = arith.constant 0 : index
    %0 = vector.load %arg1[%c0, %c0_0] : memref<104x256xf32, #tpu.memory_space<vmem>>, vector<104x256xf32>
    %1 = arith.truncf %0 : vector<104x256xf32> to vector<104x256xbf16>
    %c0_1 = arith.constant 0 : index
    %c0_2 = arith.constant 0 : index
    %2 = vector.load %arg2[%c0_1, %c0_2] : memref<256x1024xbf16, #tpu.memory_space<vmem>>, vector<256x1024xbf16>
    %cst = arith.constant dense<0.000000e+00> : vector<104x1024xf32>
    %3 = tpu.matmul %1, %2, %cst {dimension_numbers = #tpu.dot_dimension_numbers<[1], [0], [0], [1], [0, 0, 1, 1], [], []>} : vector<104x256xbf16>, vector<256x1024xbf16>, vector<104x1024xf32> -> vector<104x1024xf32>
    %c0_3 = arith.constant 0 : index
    %c0_4 = arith.constant 0 : index
    %4 = vector.load %arg3[%c0_3, %c0_4] : memref<1x1024xf32, #tpu.memory_space<vmem>>, vector<1x1024xf32>
    %5 = vector.broadcast %4 : vector<1x1024xf32> to vector<104x1024xf32>
    %6 = arith.addf %3, %5 : vector<104x1024xf32>
    %cst_5 = arith.constant 0.000000e+00 : f32
    %7 = vector.broadcast %cst_5 : f32 to vector<104x1024xf32>
    %8 = arith.maximumf %6, %7 : vector<104x1024xf32>
    %9 = vector.extract_strided_slice %8 {offsets = [0, 0], sizes = [104, 128], strides = [1, 1]} : vector<104x1024xf32> to vector<104x128xf32>
    %10 = vector.extract_strided_slice %8 {offsets = [0, 128], sizes = [104, 128], strides = [1, 1]} : vector<104x1024xf32> to vector<104x128xf32>
    %11 = arith.maximumf %9, %10 : vector<104x128xf32>
    %12 = vector.extract_strided_slice %8 {offsets = [0, 256], sizes = [104, 128], strides = [1, 1]} : vector<104x1024xf32> to vector<104x128xf32>
    %13 = arith.maximumf %11, %12 : vector<104x128xf32>
    %14 = vector.extract_strided_slice %8 {offsets = [0, 384], sizes = [104, 128], strides = [1, 1]} : vector<104x1024xf32> to vector<104x128xf32>
    %15 = arith.maximumf %13, %14 : vector<104x128xf32>
    %16 = vector.extract_strided_slice %8 {offsets = [0, 512], sizes = [104, 128], strides = [1, 1]} : vector<104x1024xf32> to vector<104x128xf32>
    %17 = arith.maximumf %15, %16 : vector<104x128xf32>
    %18 = vector.extract_strided_slice %8 {offsets = [0, 640], sizes = [104, 128], strides = [1, 1]} : vector<104x1024xf32> to vector<104x128xf32>
    %19 = arith.maximumf %17, %18 : vector<104x128xf32>
    %20 = vector.extract_strided_slice %8 {offsets = [0, 768], sizes = [104, 128], strides = [1, 1]} : vector<104x1024xf32> to vector<104x128xf32>
    %21 = arith.maximumf %19, %20 : vector<104x128xf32>
    %22 = vector.extract_strided_slice %8 {offsets = [0, 896], sizes = [104, 128], strides = [1, 1]} : vector<104x1024xf32> to vector<104x128xf32>
    %23 = arith.maximumf %21, %22 : vector<104x128xf32>
    %c64_i32 = arith.constant 64 : i32
    %24 = tpu.dynamic_rotate %23 by %c64_i32 dim 1 : vector<104x128xf32>, i32 -> vector<104x128xf32>
    %25 = arith.maximumf %23, %24 : vector<104x128xf32>
    %c32_i32 = arith.constant 32 : i32
    %26 = tpu.dynamic_rotate %25 by %c32_i32 dim 1 : vector<104x128xf32>, i32 -> vector<104x128xf32>
    %27 = tpu.iota {dimensions = array<i32: 1>} : vector<104x128xi32>
    %c64_i32_6 = arith.constant 64 : i32
    %c0_i32 = arith.constant 0 : i32
    %28 = arith.cmpi eq, %c64_i32_6, %c0_i32 : i32
    %c1_i32 = arith.constant 1 : i32
    %29 = arith.select %28, %c1_i32, %c64_i32_6 : i32
    %30 = vector.broadcast %29 : i32 to vector<104x128xi32>
    %31 = arith.remsi %27, %30 : vector<104x128xi32>
    %c0_i32_7 = arith.constant 0 : i32
    %32 = vector.broadcast %c0_i32_7 : i32 to vector<104x128xi32>
    %33 = arith.cmpi ne, %31, %32 : vector<104x128xi32>
    %c0_i32_8 = arith.constant 0 : i32
    %34 = vector.broadcast %c0_i32_8 : i32 to vector<104x128xi32>
    %35 = arith.cmpi slt, %31, %34 : vector<104x128xi32>
    %c0_i32_9 = arith.constant 0 : i32
    %36 = arith.cmpi slt, %29, %c0_i32_9 : i32
    %37 = vector.broadcast %36 : i1 to vector<104x128xi1>
    %38 = vector.broadcast %37 : vector<104x128xi1> to vector<104x128xi1>
    %39 = arith.xori %35, %38 : vector<104x128xi1>
    %40 = arith.andi %39, %33 : vector<104x128xi1>
    %41 = vector.broadcast %29 : i32 to vector<104x128xi32>
    %42 = arith.addi %31, %41 : vector<104x128xi32>
    %43 = arith.select %40, %42, %31 : vector<104x128xi1>, vector<104x128xi32>
    %c32_i32_10 = arith.constant 32 : i32
    %44 = vector.broadcast %c32_i32_10 : i32 to vector<104x128xi32>
    %45 = arith.cmpi sge, %43, %44 : vector<104x128xi32>
    %46 = vector.extract_strided_slice %8 {offsets = [0, 0], sizes = [104, 128], strides = [1, 1]} : vector<104x1024xf32> to vector<104x128xf32>
    %47 = arith.select %45, %26, %46 : vector<104x128xi1>, vector<104x128xf32>
    %c0_11 = arith.constant 0 : index
    %c0_12 = arith.constant 0 : index
    %48 = vector.load %arg4[%c0_11, %c0_12] : memref<104x1024xf32, #tpu.memory_space<vmem>>, vector<104x128xf32>
    tpu.vector_store %arg4[%c0_11, %c0_12], %47 {strides = array<i32>} : memref<104x1024xf32, #tpu.memory_space<vmem>>, vector<104x128xf32>,
    %49 = vector.extract_strided_slice %8 {offsets = [0, 128], sizes = [104, 128], strides = [1, 1]} : vector<104x1024xf32> to vector<104x128xf32>
    %50 = arith.select %45, %26, %49 : vector<104x128xi1>, vector<104x128xf32>
    %c0_13 = arith.constant 0 : index
    %c128 = arith.constant 128 : index
    %51 = vector.load %arg4[%c0_13, %c128] : memref<104x1024xf32, #tpu.memory_space<vmem>>, vector<104x128xf32>
    tpu.vector_store %arg4[%c0_13, %c128], %50 {strides = array<i32>} : memref<104x1024xf32, #tpu.memory_space<vmem>>, vector<104x128xf32>,
    %52 = vector.extract_strided_slice %8 {offsets = [0, 256], sizes = [104, 128], strides = [1, 1]} : vector<104x1024xf32> to vector<104x128xf32>
    %53 = arith.select %45, %26, %52 : vector<104x128xi1>, vector<104x128xf32>
    %c0_14 = arith.constant 0 : index
    %c256 = arith.constant 256 : index
    %54 = vector.load %arg4[%c0_14, %c256] : memref<104x1024xf32, #tpu.memory_space<vmem>>, vector<104x128xf32>
    tpu.vector_store %arg4[%c0_14, %c256], %53 {strides = array<i32>} : memref<104x1024xf32, #tpu.memory_space<vmem>>, vector<104x128xf32>,
    %55 = vector.extract_strided_slice %8 {offsets = [0, 384], sizes = [104, 128], strides = [1, 1]} : vector<104x1024xf32> to vector<104x128xf32>
    %56 = arith.select %45, %26, %55 : vector<104x128xi1>, vector<104x128xf32>
    %c0_15 = arith.constant 0 : index
    %c384 = arith.constant 384 : index
    %57 = vector.load %arg4[%c0_15, %c384] : memref<104x1024xf32, #tpu.memory_space<vmem>>, vector<104x128xf32>
    tpu.vector_store %arg4[%c0_15, %c384], %56 {strides = array<i32>} : memref<104x1024xf32, #tpu.memory_space<vmem>>, vector<104x128xf32>,
    %58 = vector.extract_strided_slice %8 {offsets = [0, 512], sizes = [104, 128], strides = [1, 1]} : vector<104x1024xf32> to vector<104x128xf32>
    %59 = arith.select %45, %26, %58 : vector<104x128xi1>, vector<104x128xf32>
    %c0_16 = arith.constant 0 : index
    %c512 = arith.constant 512 : index
    %60 = vector.load %arg4[%c0_16, %c512] : memref<104x1024xf32, #tpu.memory_space<vmem>>, vector<104x128xf32>
    tpu.vector_store %arg4[%c0_16, %c512], %59 {strides = array<i32>} : memref<104x1024xf32, #tpu.memory_space<vmem>>, vector<104x128xf32>,
    %61 = vector.extract_strided_slice %8 {offsets = [0, 640], sizes = [104, 128], strides = [1, 1]} : vector<104x1024xf32> to vector<104x128xf32>
    %62 = arith.select %45, %26, %61 : vector<104x128xi1>, vector<104x128xf32>
    %c0_17 = arith.constant 0 : index
    %c640 = arith.constant 640 : index
    %63 = vector.load %arg4[%c0_17, %c640] : memref<104x1024xf32, #tpu.memory_space<vmem>>, vector<104x128xf32>
    tpu.vector_store %arg4[%c0_17, %c640], %62 {strides = array<i32>} : memref<104x1024xf32, #tpu.memory_space<vmem>>, vector<104x128xf32>,
    %64 = vector.extract_strided_slice %8 {offsets = [0, 768], sizes = [104, 128], strides = [1, 1]} : vector<104x1024xf32> to vector<104x128xf32>
    %65 = arith.select %45, %26, %64 : vector<104x128xi1>, vector<104x128xf32>
    %c0_18 = arith.constant 0 : index
    %c768 = arith.constant 768 : index
    %66 = vector.load %arg4[%c0_18, %c768] : memref<104x1024xf32, #tpu.memory_space<vmem>>, vector<104x128xf32>
    tpu.vector_store %arg4[%c0_18, %c768], %65 {strides = array<i32>} : memref<104x1024xf32, #tpu.memory_space<vmem>>, vector<104x128xf32>,
    %67 = vector.extract_strided_slice %8 {offsets = [0, 896], sizes = [104, 128], strides = [1, 1]} : vector<104x1024xf32> to vector<104x128xf32>
    %68 = arith.select %45, %26, %67 : vector<104x128xi1>, vector<104x128xf32>
    %c0_19 = arith.constant 0 : index
    %c896 = arith.constant 896 : index
    %69 = vector.load %arg4[%c0_19, %c896] : memref<104x1024xf32, #tpu.memory_space<vmem>>, vector<104x128xf32>
    tpu.vector_store %arg4[%c0_19, %c896], %68 {strides = array<i32>} : memref<104x1024xf32, #tpu.memory_space<vmem>>, vector<104x128xf32>,
    return
  }
  func.func @transform_0(%arg0: i32) -> (i32, i32) {
    %c0_i32 = arith.constant 0 : i32
    %c0_i32_0 = arith.constant 0 : i32
    return %arg0, %c0_i32 : i32, i32
  }
  func.func @transform_1(%arg0: i32) -> (i32, i32) {
    %c0_i32 = arith.constant 0 : i32
    %c0_i32_0 = arith.constant 0 : i32
    %c0_i32_1 = arith.constant 0 : i32
    return %c0_i32, %c0_i32_0 : i32, i32
  }
  func.func @transform_2(%arg0: i32) -> (i32, i32) {
    %c0_i32 = arith.constant 0 : i32
    %c0_i32_0 = arith.constant 0 : i32
    %c0_i32_1 = arith.constant 0 : i32
    return %c0_i32, %c0_i32_0 : i32, i32
  }
  func.func @transform_3(%arg0: i32) -> (i32, i32) {
    %c0_i32 = arith.constant 0 : i32
    %c0_i32_0 = arith.constant 0 : i32
    return %arg0, %c0_i32 : i32, i32
  }
}

</mosaic_0001>

<bundles_post_ra>
// kernel: tpu_custom_call.1
= control target key start
LH: loop header
LB: loop body
LE: loop exit
PB: predicated region body
PF: predicated region fallthrough
CT: control target
= control target key end

     0   :  { %8 = vsyncpa [#allocation3], 0  ;;  %s4233_s0 = inlined_call_operand.hbm [shape: f32[208,256], index: 0, kind: input, shape index: {}]   ;;  %s4234_s1 = inlined_call_operand.hbm [shape: bf16[256,1024], index: 1, kind: input, shape index: {}]   ;;  %s4235_s2 = inlined_call_operand.hbm [shape: f32[1,1024], index: 2, kind: input, shape index: {}]   ;;  %s4236_s3 = inlined_call_operand.hbm [shape: f32[208,1024], index: 3, kind: output, shape index: {}]  }
   0x1   :  { %10 = vsyncpa [#allocation3 + $0x1], 0 }
   0x2   :  { %11 = vsyncpa [#allocation6], 0 }
   0x3   :  { %12 = vsyncpa [#allocation4], 0 }
   0x4   :  { %14 = vsyncpa [#allocation4 + $0x1], 0  ;;  %s2477_s12 = smov 0   ;;  %s2479_s13 = smov 0  }
   0x5   :  { %s2481_s14 = smov 0   ;;  %s2483_s15 = smov 0  }
   0x6 LB: > { %s2498_s16 = sadd.s32 4294967295, %s2444_s15   ;;  %s2063_s17 = sadd.s32 4294967294, %s2444_s15   ;;  %s2444_s15 = sphi %s2483_s15, %s4666_s15   ;;  %s2440_s14 = sphi %s2481_s14, %s4665_s14   ;;  %s2436_s13 = sphi %s2479_s13, %s4664_s13   ;;  %s2432_s12 = sphi %s2477_s12, %s4663_s12  }
   0x7   : > { %p40_p0 = scmp.ne.s32.totalorder %s2436_s13, %s2432_s12  ;;  %p4237_p1 = scmp.eq.s32.totalorder %s2498_s16, 0 }
   0x8   : > { %p112_p3 = scmp.eq.s32.totalorder %s2063_s17, 1  ;;  %p2064_p5 = scmp.ge.s32.totalorder %s2444_s15, 1 }
   0x9   : > { %p2507_p4 = por %p4237_p1, %p40_p0  ;;  %p119_p7 = scmp.lt.s32.totalorder %s2444_s15, 3 }
   0xa   : > { %p2512_p6 = por %p112_p3, %p40_p0  ;;  %s2446_s21 = smov [#allocation5]  }
   0xb   : > { %s4338_s18 = scalar_select %p2507_p4, 1, 0 }
   0xc   : > { %s4339_s19 = scalar_select %p2512_p6, 1, 0 }
   0xd   : > { %p2517_p8 = pnand %p2064_p5, %p119_p7  ;;  %s131_s22 = sshll.u32 %s2446_s21, 4  ;;  %s2521_s22 = int_to_ptr.vmem [resolvable:$true] %s131_s22 }
   0xe   : > { %s2447_s24 = smov [#allocation7]   ;;  %s2288_s28 = scalar_lea.hbm %s4234_s1, 16384 }
   0xf   : > { %p2226_p9 = pneg %p2517_p8  ;;  %s145_s25 = sshll.u32 %s2447_s24, 4  ;;  %s2532_s25 = int_to_ptr.vmem [resolvable:$true] %s145_s25 }
  0x10   : > { %p2289_p12 = scmp.ne.s32.totalorder %s4234_s1, %s2288_s28  ;;  %p2295_p5 = scmp.lt.u32.totalorder %s2288_s28, %s4234_s1 }
  0x11   : > { %p2528_p11 = pnand %p2226_p9, %p4237_p1 }
  0x13   : > { %p2290_p13 = pneg %p2528_p11 }
  0x15   : > { %p2291_p0 = pnand %p2290_p13, %p2289_p12 }
  0x17   : > { %p2292_p3 = pneg %p2291_p0 }
  0x19   : > { %p2297_p7 = pnand %p2295_p5, %p2292_p3 }
  0x1b   : > { %2300 = shalt.err (!%p2297_p7)
}
  0x1c   : > { %s2301_s6 = scalar_lea.vmem %s2521_s22, 16384  ;;  %p2309_p2 = scmp.lt.s32.totalorder %s2521_s22, %s2521_s22 }
  0x1d   : > { %p2302_p9 = scmp.ne.s32.totalorder %s2521_s22, %s2301_s6  ;;  %p2310_p12 = scmp.lt.s32.totalorder %s2301_s6, %s2301_s6 }
  0x1f   : > { %p2304_p10 = pnand %p2302_p9, %p2290_p13  ;;  %p2311_p0 = por %p2310_p12, %p2309_p2 }
  0x21   : > { %p2305_p1 = pneg %p2304_p10 }
  0x23   : > { %p2312_p6 = pnand %p2311_p0, %p2305_p1 }
  0x25   : > { %2315 = shalt.err (!%p2312_p6)
}
  0x26   : > { %s2448_s7 = smov 512   ;;  %s2449_s8 = smov 32  }
  0x27   : > { %2229 = dma.hbm_to_vmem [thread:$0]  (!%p2528_p11), %s4234_s1, 16384, %s2521_s22, [#allocation6], %s2448_s7, %s2448_s7, %s2449_s8  }
  0x28   : > { %s2316_s21 = scalar_lea.hbm %s4235_s2, 128 }
  0x29   : > { %p2317_p2 = scmp.ne.s32.totalorder %s4235_s2, %s2316_s21  ;;  %p2323_p10 = scmp.lt.u32.totalorder %s2316_s21, %s4235_s2 }
  0x2b   : > { %p2319_p1 = pnand %p2317_p2, %p2290_p13 }
  0x2d   : > { %p2320_p6 = pneg %p2319_p1 }
  0x2f   : > { %p2325_p3 = pnand %p2323_p10, %p2320_p6 }
  0x31   : > { %2328 = shalt.err (!%p2325_p3)
}
  0x32   : > { %s2329_s22 = scalar_lea.vmem %s2532_s25, 128  ;;  %p2337_p12 = scmp.lt.s32.totalorder %s2532_s25, %s2532_s25 }
  0x33   : > { %p2330_p5 = scmp.ne.s32.totalorder %s2532_s25, %s2329_s22  ;;  %p2338_p0 = scmp.lt.s32.totalorder %s2329_s22, %s2329_s22 }
  0x35   : > { %p2332_p7 = pnand %p2330_p5, %p2290_p13  ;;  %p2339_p2 = por %p2338_p0, %p2337_p12 }
  0x37   : > { %p2333_p9 = pneg %p2332_p7 }
  0x39   : > { %p2340_p1 = pnand %p2339_p2, %p2333_p9 }
  0x3b   : > { %2343 = shalt.err (!%p2340_p1)
}
  0x3c   : > { %2232 = dma.hbm_to_vmem [thread:$0]  (!%p2528_p11), %s4235_s2, 128, %s2532_s25, [#allocation6]  }
  0x3d   : > { %s2587_s4 = sadd.s32 1, %s2444_s15   ;;  %s27_s23 = sadd.s32 1, %s2440_s14 }
  0x3e   : > { %s24_s5 = ssub.s32 %s2444_s15, %s2587_s4  ;;  %p34_p13 = scmp.ne.s32.totalorder %s2440_s14, %s2436_s13 }
  0x3f   : > { %p25_p6 = scmp.eq.s32.totalorder %s24_s5, 0  ;;  %p35_p10 = scmp.eq.s32.totalorder %s2444_s15, 0 }
  0x40   : > { %p4342_p3 = scmp.eq.s32.totalorder %s2498_s16, 1  ;;  %p2243_p7 = scmp.lt.s32.totalorder %s2444_s15, 2 }
  0x41   : > { %s2603_s7 = scalar_select %p25_p6, %s2440_s14, %s27_s23  }
  0x42   : > { %p2597_p5 = por %p4342_p3, %p34_p13  ;;  %p36_p9 = por %p35_p10, %p34_p13 }
  0x43   : > { %s156_s8 = sand.u32 1, %s2440_s14   ;;  %s2209_s25 = smul.u32 3328, %s2444_s15 }
  0x44   : > { %s4343_s6 = scalar_select %p2597_p5, 1, 0 }
  0x45   : > { %s2211_s9 = smul.u32 208, %s156_s8  ;;  %p2607_p11 = pnand %p2243_p7, %p36_p9 }
  0x46   : > { %s2614_s21 = scalar_lea.hbm %s4233_s0, %s2209_s25  ;;  %s2618_s27 = scalar_lea.sflag [#allocation3], %s156_s8 }
  0x47   : > { %s160_s24 = scalar_lea.vmem [#allocation2], %s2211_s9  ;;  %s2344_s28 = scalar_lea.hbm %s2614_s21, 3328 }
  0x48   : > { %s168_s26 = sshll.u32 %s160_s24, 4  ;;  %p2345_p12 = scmp.ne.s32.totalorder %s2614_s21, %s2344_s28  ;;  %s2616_s26 = int_to_ptr.vmem [resolvable:$true] %s168_s26 }
  0x49   : > { %p2346_p0 = pneg %p2607_p11  ;;  %s2349_s30 = scalar_lea.hbm %s4233_s0, 6656 }
  0x4a   : > { %p2350_p13 = scmp.lt.u32.totalorder %s2614_s21, %s4233_s0  ;;  %p2351_p6 = scmp.lt.u32.totalorder %s2349_s30, %s2344_s28 }
  0x4b   : > { %p2347_p2 = pnand %p2346_p0, %p2345_p12  ;;  %p2353_p3 = scmp.lt.u32.totalorder %s2344_s28, %s2614_s21 }
  0x4c   : > { %p2352_p10 = por %p2351_p6, %p2350_p13 }
  0x4d   : > { %p2348_p1 = pneg %p2347_p2 }
  0x4e   : > { %p2354_p7 = por %p2353_p3, %p2352_p10 }
  0x50   : > { %p2355_p9 = pnand %p2354_p7, %p2348_p1 }
  0x52   : > { %2358 = shalt.err (!%p2355_p9)
}
  0x53   : > { %s2359_s8 = scalar_lea.vmem %s2616_s26, 3328  ;;  %s2450_s9 = smov [#allocation2]  }
  0x54   : > { %p2360_p12 = scmp.ne.s32.totalorder %s2616_s26, %s2359_s8  ;;  %s2364_s25 = sshll.u32 %s2450_s9, 4  ;;  %s2365_s25 = int_to_ptr.vmem [resolvable:$false] %s2364_s25 }
  0x55   : > { %s2366_s11 = scalar_lea.vmem %s2365_s25, 6656  ;;  %p2367_p4 = scmp.lt.s32.totalorder %s2616_s26, %s2365_s25 }
  0x56   : > { %p2362_p2 = pnand %p2360_p12, %p2346_p0  ;;  %p2368_p13 = scmp.lt.s32.totalorder %s2366_s11, %s2359_s8 }
  0x58   : > { %p2363_p5 = pneg %p2362_p2  ;;  %p2369_p6 = por %p2368_p13, %p2367_p4 }
  0x5a   : > { %p2370_p10 = pnand %p2369_p6, %p2363_p5 }
  0x5c   : > { %2373 = shalt.err (!%p2370_p10)
}
  0x5d   : > { %s2451_s17 = smov 256   ;;  %s2452_s24 = smov 16  }
  0x5e   : > { %2236 = dma.hbm_to_vmem [thread:$0]  (!%p2607_p11), %s2614_s21, 3328, %s2616_s26, %s2618_s27, %s2451_s17, %s2451_s17, %s2452_s24  }
  0x5f   : > { %180 = sbr.rel (%p2517_p8) target bundleno = 768 (0x300), region = 32 }
  0x66   : > { %s2649_s28 = sand.u32 1, %s2436_s13   ;;  %p4345_p4 = scmp.ne.s32.totalorder %s4338_s18, 0 }
  0x67   : > { %s2212_s22 = smul.u32 208, %s2649_s28  ;;  %s183_s29 = scalar_lea.sflag [#allocation3], %s2649_s28 }
  0x69   : > { %s2653_s30 = scalar_lea.vmem [#allocation2], %s2212_s22 }
  0x6a   : > { %2419 = dma.done.wait (%p4345_p4), %s183_s29, 3328  }
  0x6b   : > { %2421 = vsyncadd (%p4345_p4), %s183_s29, 4294963968  ;;  %p4346_p5 = scmp.eq.s32.totalorder %s2498_s16, 0 }
  0x6d   : > { %2423 = dma.done.wait (%p4346_p5), [#allocation6], 16512   ;;  %p4347_p8 = pmov %p4346_p5 }
  0x6e   : > { %v259_v0 = vld [vmem:[#allocation5] sm:$0xff]  ;;  %v260_v2 = vld [vmem:[#allocation5 + $0x8] sm:$0xff]  ;;  %s2453_s18 = smov 64   ;;  %s2454_s20 = smov 32  }
  0x6f   : > { %2425 = vsyncadd (%p4347_p8), [#allocation6], 4294950784  ;;  %v263_v1 = vld [vmem:[#allocation5 + $0x20] sm:$0xff]  ;;  %v264_v5 = vld [vmem:[#allocation5 + $0x28] sm:$0xff]  ;;  %s2213_s10 = smul.u32 832, %s2649_s28  ;;  %s1957_s8 = scalar_lea.sflag [#allocation4], %s2649_s28 }
  0x70   : > { %v2074_v3 = vcombine.high %v259_v0, %v263_v1  ;;  %v2073_v4 = vcombine.low %v259_v0, %v263_v1  ;;  %v267_v6 = vld [vmem:[#allocation5 + $0x40] sm:$0xff]  ;;  %v2076_v8 = vcombine.high %v260_v2, %v264_v5  ;;  %v2075_v9 = vcombine.low %v260_v2, %v264_v5  ;;  %v268_v11 = vld [vmem:[#allocation5 + $0x48] sm:$0xff]  ;;  %s2210_s26 = smul.u32 13312, %s2498_s16  ;;  %p4660_p0 = scmp.ne.s32.totalorder %s4343_s6, 0 }
  0x71   : > { %v271_v7 = vld [vmem:[#allocation5 + $0x60] sm:$0xff]  ;;  %v272_v12 = vld [vmem:[#allocation5 + $0x68] sm:$0xff]  ;;  %s3675_s21 = scalar_lea.vmem [#allocation8], %s2213_s10  ;;  %s2455_s25 = smov [#allocation8]  }
  0x72   : > { %v2082_v10 = vcombine.high %v267_v6, %v271_v7  ;;  %v275_v13 = vld [vmem:[#allocation5 + $0x80] sm:$0xff]  ;;  %1069 = vmatprep.subr.bf16.mxu0 %v2074_v3  ;;  %v2084_v14 = vcombine.high %v268_v11, %v272_v12  ;;  %v276_v16 = vld [vmem:[#allocation5 + $0x88] sm:$0xff]  ;;  %1170 = vmatprep.subr.bf16.mxu1 %v2076_v8  ;;  %v2081_v18 = vcombine.low %v267_v6, %v271_v7  ;;  %s1971_s27 = sshll.u32 %s3675_s21, 4  ;;  %s4162_s5 = scalar_lea.hbm %s4236_s3, %s2210_s26  ;;  %s4164_s27 = int_to_ptr.vmem [resolvable:$true] %s1971_s27 }
  0x73   : > { %v279_v15 = vld [vmem:[#allocation5 + $0xa0] sm:$0xff]  ;;  %v280_v17 = vld [vmem:[#allocation5 + $0xa8] sm:$0xff]  ;;  %1070 = vmatpush1.bf16.msra.mxu0 %v2073_v4  ;;  %1171 = vmatpush1.bf16.msra.mxu1 %v2075_v9  ;;  %v2083_v19 = vcombine.low %v268_v11, %v272_v12  ;;  %s2374_s9 = scalar_lea.vmem %s4164_s27, 13312  ;;  %s2378_s11 = sshll.u32 %s2455_s25, 4  ;;  %s2379_s11 = int_to_ptr.vmem [resolvable:$false] %s2378_s11 }
  0x74   : > { %1071 = vmatprep.subr.bf16.mxu0 %v2082_v10  ;;  %v2090_v20 = vcombine.high %v275_v13, %v279_v15  ;;  %1172 = vmatprep.subr.bf16.mxu1 %v2084_v14  ;;  %v2092_v21 = vcombine.high %v276_v16, %v280_v17  ;;  %v283_v22 = vld [vmem:[#allocation5 + $0xc0] sm:$0xff]  ;;  %v284_v24 = vld [vmem:[#allocation5 + $0xc8] sm:$0xff]  ;;  %v2089_v26 = vcombine.low %v275_v13, %v279_v15  ;;  %p2375_p11 = scmp.ne.s32.totalorder %s4164_s27, %s2374_s9  ;;  %s2380_s17 = scalar_lea.vmem %s2379_s11, 26624 }
  0x75   : > { %v287_v23 = vld [vmem:[#allocation5 + $0xe0] sm:$0xff]  ;;  %v288_v25 = vld [vmem:[#allocation5 + $0xe8] sm:$0xff]  ;;  %v2091_v27 = vcombine.low %v276_v16, %v280_v17  ;;  %p2381_p7 = scmp.lt.s32.totalorder %s4164_s27, %s2379_s11  ;;  %p2382_p9 = scmp.lt.s32.totalorder %s2380_s17, %s2374_s9 }
  0x76   : > { %v2098_v28 = vcombine.high %v283_v22, %v287_v23  ;;  %v2100_v29 = vcombine.high %v284_v24, %v288_v25  ;;  %v291_v30 = vld [vmem:[#allocation5 + $0x100] sm:$0xff]  ;;  %v292_v32 = vld [vmem:[#allocation5 + $0x108] sm:$0xff]  ;;  %v2097_v34 = vcombine.low %v283_v22, %v287_v23  ;;  %v2099_v35 = vcombine.low %v284_v24, %v288_v25  ;;  %p2376_p1 = pnand %p2375_p11, %p4660_p0 }
  0x77   : > { %1072 = vmatpush1.bf16.msra.mxu0 %v2081_v18  ;;  %1173 = vmatpush1.bf16.msra.mxu1 %v2083_v19  ;;  %v295_v31 = vld [vmem:[#allocation5 + $0x120] sm:$0xff]  ;;  %v296_v33 = vld [vmem:[#allocation5 + $0x128] sm:$0xff]  ;;  %p2383_p12 = por %p2382_p9, %p2381_p7 }
  0x78   : > { %1073 = vmatprep.subr.bf16.mxu0 %v2090_v20  ;;  %1174 = vmatprep.subr.bf16.mxu1 %v2092_v21  ;;  %v2106_v36 = vcombine.high %v291_v30, %v295_v31  ;;  %v2108_v37 = vcombine.high %v292_v32, %v296_v33  ;;  %v299_v38 = vld [vmem:[#allocation5 + $0x140] sm:$0xff]  ;;  %v300_v40 = vld [vmem:[#allocation5 + $0x148] sm:$0xff]  ;;  %v2105_v42 = vcombine.low %v291_v30, %v295_v31  ;;  %p2377_p3 = pneg %p2376_p1 }
  0x79   : > { %v303_v39 = vld [vmem:[#allocation5 + $0x160] sm:$0xff]  ;;  %v304_v41 = vld [vmem:[#allocation5 + $0x168] sm:$0xff]  ;;  %v2107_v43 = vcombine.low %v292_v32, %v296_v33 }
  0x7a   : > { %v2114_v44 = vcombine.high %v299_v38, %v303_v39  ;;  %v2116_v45 = vcombine.high %v300_v40, %v304_v41  ;;  %v307_v46 = vld [vmem:[#allocation5 + $0x180] sm:$0xff]  ;;  %v308_v48 = vld [vmem:[#allocation5 + $0x188] sm:$0xff]  ;;  %v2113_v50 = vcombine.low %v299_v38, %v303_v39  ;;  %v2115_v51 = vcombine.low %v300_v40, %v304_v41  ;;  %p2384_p2 = pnand %p2383_p12, %p2377_p3 }
  0x7b   : > { %1074 = vmatpush1.bf16.msra.mxu0 %v2089_v26  ;;  %1175 = vmatpush1.bf16.msra.mxu1 %v2091_v27  ;;  %v311_v47 = vld [vmem:[#allocation5 + $0x1a0] sm:$0xff]  ;;  %v312_v49 = vld [vmem:[#allocation5 + $0x1a8] sm:$0xff] }
  0x7c   : > { %1075 = vmatprep.subr.bf16.mxu0 %v2098_v28  ;;  %1176 = vmatprep.subr.bf16.mxu1 %v2100_v29  ;;  %v2122_v52 = vcombine.high %v307_v46, %v311_v47  ;;  %v220_v53 = vld [vmem:[%s2653_s30 + $0x8] sm:$0xff]  ;;  %v222_v54 = vld [vmem:[%s2653_s30 + $0x18] sm:$0xff]  ;;  %v2124_v55 = vcombine.high %v308_v48, %v312_v49  ;;  %v315_v56 = vld [vmem:[#allocation5 + $0x1c0] sm:$0xff]  ;;  %v2121_v61 = vcombine.low %v307_v46, %v311_v47 }
  0x7d   : > { %v319_v57 = vld [vmem:[#allocation5 + $0x1e0] sm:$0xff]  ;;  %v2665_v58 = vpack.c.bf16 %v222_v54, %v220_v53  ;;  %v316_v59 = vld [vmem:[#allocation5 + $0x1c8] sm:$0xff]  ;;  %v2123_v62 = vcombine.low %v308_v48, %v312_v49 }
  0x7e   : > { %v320_v60 = vld [vmem:[#allocation5 + $0x1e8] sm:$0xff]  ;;  %v2130_v63 = vcombine.high %v315_v56, %v319_v57  ;;  %v323_v1 = vld [vmem:[#allocation5 + $0x200] sm:$0xff]  ;;  %v2129_v5 = vcombine.low %v315_v56, %v319_v57 }
  0x7f   : > { %1076 = vmatpush1.bf16.msra.mxu0 %v2097_v34  ;;  %1177 = vmatpush1.bf16.msra.mxu1 %v2099_v35  ;;  %v2132_v0 = vcombine.high %v316_v59, %v320_v60  ;;  %v327_v2 = vld [vmem:[#allocation5 + $0x220] sm:$0xff]  ;;  %v324_v3 = vld [vmem:[#allocation5 + $0x208] sm:$0xff]  ;;  %v2131_v6 = vcombine.low %v316_v59, %v320_v60 }
  0x80   : > { %1077 = vmatprep.subr.bf16.mxu0 %v2106_v36  ;;  %1178 = vmatprep.subr.bf16.mxu1 %v2108_v37  ;;  %v328_v4 = vld [vmem:[#allocation5 + $0x228] sm:$0xff]  ;;  %v2138_v7 = vcombine.high %v323_v1, %v327_v2  ;;  %v331_v9 = vld [vmem:[#allocation5 + $0x240] sm:$0xff]  ;;  %v2137_v13 = vcombine.low %v323_v1, %v327_v2  ;;  %v261_v2 = vld [vmem:[#allocation5 + $0x10] sm:$0xff] }
  0x81   : > { %1101 = vmatprep.mubr.bf16.mxu0 %v2665_v58  ;;  %1202 = vmatprep.mubr.bf16.mxu1 %v2665_v58  ;;  %v2140_v8 = vcombine.high %v324_v3, %v328_v4  ;;  %v335_v10 = vld [vmem:[#allocation5 + $0x260] sm:$0xff]  ;;  %v332_v11 = vld [vmem:[#allocation5 + $0x248] sm:$0xff]  ;;  %v2139_v14 = vcombine.low %v324_v3, %v328_v4  ;;  %v265_v3 = vld [vmem:[#allocation5 + $0x30] sm:$0xff] }
  0x82   : > { %v336_v12 = vld [vmem:[#allocation5 + $0x268] sm:$0xff]  ;;  %v2146_v15 = vcombine.high %v331_v9, %v335_v10  ;;  %v339_v17 = vld [vmem:[#allocation5 + $0x280] sm:$0xff]  ;;  %v2145_v21 = vcombine.low %v331_v9, %v335_v10  ;;  %v262_v4 = vld [vmem:[#allocation5 + $0x18] sm:$0xff]  ;;  %v2078_v10 = vcombine.high %v261_v2, %v265_v3 }
  0x83   : > { %1078 = vmatpush1.bf16.msra.mxu0 %v2105_v42  ;;  %1179 = vmatpush1.bf16.msra.mxu1 %v2107_v43  ;;  %v2148_v16 = vcombine.high %v332_v11, %v336_v12  ;;  %v343_v18 = vld [vmem:[#allocation5 + $0x2a0] sm:$0xff]  ;;  %v340_v19 = vld [vmem:[#allocation5 + $0x288] sm:$0xff]  ;;  %v2147_v22 = vcombine.low %v332_v11, %v336_v12  ;;  %v269_v12 = vld [vmem:[#allocation5 + $0x50] sm:$0xff] }
  0x84   : > { %1079 = vmatprep.subr.bf16.mxu0 %v2114_v44  ;;  %1180 = vmatprep.subr.bf16.mxu1 %v2116_v45  ;;  %v344_v20 = vld [vmem:[#allocation5 + $0x2a8] sm:$0xff]  ;;  %v2154_v23 = vcombine.high %v339_v17, %v343_v18  ;;  %v347_v25 = vld [vmem:[#allocation5 + $0x2c0] sm:$0xff]  ;;  %v2153_v29 = vcombine.low %v339_v17, %v343_v18 }
  0x85   : > { %v2156_v24 = vcombine.high %v340_v19, %v344_v20  ;;  %v351_v26 = vld [vmem:[#allocation5 + $0x2e0] sm:$0xff]  ;;  %v348_v27 = vld [vmem:[#allocation5 + $0x2c8] sm:$0xff]  ;;  %v2155_v30 = vcombine.low %v340_v19, %v344_v20  ;;  %v2077_v19 = vcombine.low %v261_v2, %v265_v3 }
  0x86   : > { %v352_v28 = vld [vmem:[#allocation5 + $0x2e8] sm:$0xff]  ;;  %v2162_v31 = vcombine.high %v347_v25, %v351_v26  ;;  %v355_v33 = vld [vmem:[#allocation5 + $0x300] sm:$0xff]  ;;  %v2161_v37 = vcombine.low %v347_v25, %v351_v26  ;;  %v278_v26 = vld [vmem:[#allocation5 + $0x98] sm:$0xff] }
  0x87   : > { %1080 = vmatpush1.bf16.msra.mxu0 %v2113_v50  ;;  %1181 = vmatpush1.bf16.msra.mxu1 %v2115_v51  ;;  %v2164_v32 = vcombine.high %v348_v27, %v352_v28  ;;  %v359_v34 = vld [vmem:[#allocation5 + $0x320] sm:$0xff]  ;;  %v356_v35 = vld [vmem:[#allocation5 + $0x308] sm:$0xff]  ;;  %v2163_v38 = vcombine.low %v348_v27, %v352_v28  ;;  %v282_v27 = vld [vmem:[#allocation5 + $0xb8] sm:$0xff] }
  0x88   : > { %1081 = vmatprep.subr.bf16.mxu0 %v2122_v52  ;;  %1182 = vmatprep.subr.bf16.mxu1 %v2124_v55  ;;  %v360_v36 = vld [vmem:[#allocation5 + $0x328] sm:$0xff]  ;;  %v2170_v39 = vcombine.high %v355_v33, %v359_v34  ;;  %v363_v41 = vld [vmem:[#allocation5 + $0x340] sm:$0xff]  ;;  %v2169_v45 = vcombine.low %v355_v33, %v359_v34  ;;  %v2096_v33 = vcombine.high %v278_v26, %v282_v27  ;;  %v285_v34 = vld [vmem:[#allocation5 + $0xd0] sm:$0xff] }
  0x89   : > { %v2172_v40 = vcombine.high %v356_v35, %v360_v36  ;;  %v367_v42 = vld [vmem:[#allocation5 + $0x360] sm:$0xff]  ;;  %v364_v43 = vld [vmem:[#allocation5 + $0x348] sm:$0xff]  ;;  %v2171_v46 = vcombine.low %v356_v35, %v360_v36  ;;  %v289_v35 = vld [vmem:[#allocation5 + $0xf0] sm:$0xff] }
  0x8a   : > { %v368_v44 = vld [vmem:[#allocation5 + $0x368] sm:$0xff]  ;;  %v2178_v47 = vcombine.high %v363_v41, %v367_v42  ;;  %v371_v49 = vld [vmem:[#allocation5 + $0x380] sm:$0xff]  ;;  %v2177_v53 = vcombine.low %v363_v41, %v367_v42  ;;  %v286_v36 = vld [vmem:[#allocation5 + $0xd8] sm:$0xff]  ;;  %v2095_v42 = vcombine.low %v278_v26, %v282_v27 }
  0x8b   : > { %1082 = vmatpush1.bf16.msra.mxu0 %v2121_v61  ;;  %1183 = vmatpush1.bf16.msra.mxu1 %v2123_v62  ;;  %v2180_v48 = vcombine.high %v364_v43, %v368_v44  ;;  %v375_v50 = vld [vmem:[#allocation5 + $0x3a0] sm:$0xff]  ;;  %v372_v51 = vld [vmem:[#allocation5 + $0x388] sm:$0xff]  ;;  %v2179_v54 = vcombine.low %v364_v43, %v368_v44  ;;  %v2102_v43 = vcombine.high %v285_v34, %v289_v35 }
  0x8c   : > { %1083 = vmatprep.subr.bf16.mxu0 %v2130_v63  ;;  %1184 = vmatprep.subr.bf16.mxu1 %v2132_v0  ;;  %v376_v52 = vld [vmem:[#allocation5 + $0x3a8] sm:$0xff]  ;;  %v2186_v55 = vcombine.high %v371_v49, %v375_v50  ;;  %v379_v57 = vld [vmem:[#allocation5 + $0x3c0] sm:$0xff]  ;;  %v2185_v62 = vcombine.low %v371_v49, %v375_v50  ;;  %v298_v49 = vld [vmem:[#allocation5 + $0x138] sm:$0xff]  ;;  %v2101_v50 = vcombine.low %v285_v34, %v289_v35 }
  0x8d   : > { %v2188_v56 = vcombine.high %v372_v51, %v376_v52  ;;  %v383_v59 = vld [vmem:[#allocation5 + $0x3e0] sm:$0xff]  ;;  %v380_v60 = vld [vmem:[#allocation5 + $0x3c8] sm:$0xff]  ;;  %v2187_v63 = vcombine.low %v372_v51, %v376_v52 }
  0x8e   : > { %v384_v61 = vld [vmem:[#allocation5 + $0x3e8] sm:$0xff]  ;;  %v2194_v0 = vcombine.high %v379_v57, %v383_v59  ;;  %v227_v51 = vld [vmem:[%s2653_s30 + $0x40] sm:$0xff]  ;;  %v229_v52 = vld [vmem:[%s2653_s30 + $0x50] sm:$0xff] }
  0x8f   : > { %1084 = vmatpush1.bf16.msra.mxu0 %v2129_v5  ;;  %1185 = vmatpush1.bf16.msra.mxu1 %v2131_v6  ;;  %v2196_v1 = vcombine.high %v380_v60, %v384_v61  ;;  %v266_v5 = vld [vmem:[#allocation5 + $0x38] sm:$0xff]  ;;  %v2193_v6 = vcombine.low %v379_v57, %v383_v59  ;;  %v2195_v9 = vcombine.low %v380_v60, %v384_v61  ;;  %v305_v57 = vld [vmem:[#allocation5 + $0x170] sm:$0xff] }
  0x90   : > { %1085 = vmatprep.subr.bf16.mxu0 %v2138_v7  ;;  %1186 = vmatprep.subr.bf16.mxu1 %v2140_v8  ;;  %v219_v7 = vld [vmem:[%s2653_s30] sm:$0xff]  ;;  %v221_v8 = vld [vmem:[%s2653_s30 + $0x10] sm:$0xff]  ;;  %v2080_v11 = vcombine.high %v262_v4, %v266_v5  ;;  %v224_v17 = vld [vmem:[%s2653_s30 + $0x28] sm:$0xff]  ;;  %v2079_v20 = vcombine.low %v262_v4, %v266_v5  ;;  %v2694_v60 = vpack.c.bf16 %v229_v52, %v227_v51 }
  0x91   : > { %v226_v18 = vld [vmem:[%s2653_s30 + $0x38] sm:$0xff]  ;;  %v309_v4 = vld [vmem:[#allocation5 + $0x190] sm:$0xff] }
  0x92   : > { %v2675_v25 = vpack.c.bf16 %v226_v18, %v224_v17  ;;  %v302_v59 = vld [vmem:[#allocation5 + $0x158] sm:$0xff]  ;;  %v313_v5 = vld [vmem:[#allocation5 + $0x1b0] sm:$0xff] }
  0x93   : > { %1086 = vmatpush1.bf16.msra.mxu0 %v2137_v13  ;;  %1187 = vmatpush1.bf16.msra.mxu1 %v2139_v14  ;;  %v273_v13 = vld [vmem:[#allocation5 + $0x70] sm:$0xff]  ;;  %v270_v14 = vld [vmem:[#allocation5 + $0x58] sm:$0xff] }
  0x94   : > { %1087 = vmatprep.subr.bf16.mxu0 %v2146_v15  ;;  %1188 = vmatprep.subr.bf16.mxu1 %v2148_v16  ;;  %v2671_v15 = vpack.c.bf16 %v221_v8, %v219_v7  ;;  %v274_v16 = vld [vmem:[#allocation5 + $0x78] sm:$0xff]  ;;  %v2085_v28 = vcombine.low %v269_v12, %v273_v13  ;;  %v321_v17 = vld [vmem:[#allocation5 + $0x1f0] sm:$0xff] }
  0x95   : > { %v306_v61 = vld [vmem:[#allocation5 + $0x178] sm:$0xff]  ;;  %v235_v34 = vld [vmem:[%s2653_s30 + $0x80] sm:$0xff]  ;;  %v237_v35 = vld [vmem:[%s2653_s30 + $0x90] sm:$0xff] }
  0x96   : > { %v2120_v3 = vcombine.high %v302_v59, %v306_v61  ;;  %v310_v7 = vld [vmem:[#allocation5 + $0x198] sm:$0xff]  ;;  %v341_v52 = vld [vmem:[#allocation5 + $0x290] sm:$0xff] }
  0x97   : > { %1088 = vmatpush1.bf16.msra.mxu0 %v2145_v21  ;;  %1189 = vmatpush1.bf16.msra.mxu1 %v2147_v22  ;;  %v2086_v21 = vcombine.high %v269_v12, %v273_v13  ;;  %v2088_v22 = vcombine.high %v270_v14, %v274_v16  ;;  %v314_v8 = vld [vmem:[#allocation5 + $0x1b8] sm:$0xff]  ;;  %v2119_v12 = vcombine.low %v302_v59, %v306_v61  ;;  %v239_v59 = vld [vmem:[%s2653_s30 + $0xa0] sm:$0xff]  ;;  %v241_v61 = vld [vmem:[%s2653_s30 + $0xb0] sm:$0xff] }
  0x98   : > { %1089 = vmatprep.subr.bf16.mxu0 %v2154_v23  ;;  %1190 = vmatprep.subr.bf16.mxu1 %v2156_v24  ;;  %v277_v23 = vld [vmem:[#allocation5 + $0x90] sm:$0xff]  ;;  %v2126_v13 = vcombine.high %v309_v4, %v313_v5  ;;  %v318_v18 = vld [vmem:[#allocation5 + $0x1d8] sm:$0xff] }
  0x99   : > { %v281_v24 = vld [vmem:[#allocation5 + $0xb0] sm:$0xff] }
  0x9a   : > { %v2093_v41 = vcombine.low %v277_v23, %v281_v24 }
  0x9b   : > { %1090 = vmatpush1.bf16.msra.mxu0 %v2153_v29  ;;  %1191 = vmatpush1.bf16.msra.mxu1 %v2155_v30  ;;  %v223_v29 = vld [vmem:[%s2653_s30 + $0x20] sm:$0xff]  ;;  %v225_v30 = vld [vmem:[%s2653_s30 + $0x30] sm:$0xff] }
  0x9c   : > { %1091 = vmatprep.subr.bf16.mxu0 %v2162_v31  ;;  %1192 = vmatprep.subr.bf16.mxu1 %v2164_v32  ;;  %v2087_v31 = vcombine.low %v270_v14, %v274_v16  ;;  %v2094_v32 = vcombine.high %v277_v23, %v281_v24  ;;  %v2128_v14 = vcombine.high %v310_v7, %v314_v8  ;;  %v317_v16 = vld [vmem:[#allocation5 + $0x1d0] sm:$0xff] }
  0x9d   : > { %v2125_v23 = vcombine.low %v309_v4, %v313_v5  ;;  %v2127_v24 = vcombine.low %v310_v7, %v314_v8  ;;  %v2134_v26 = vcombine.high %v317_v16, %v321_v17  ;;  %v350_v4 = vld [vmem:[#allocation5 + $0x2d8] sm:$0xff] }
  0x9e   : > { %v354_v5 = vld [vmem:[#allocation5 + $0x2f8] sm:$0xff] }
  0x9f   : > { %1092 = vmatpush1.bf16.msra.mxu0 %v2161_v37  ;;  %1193 = vmatpush1.bf16.msra.mxu1 %v2163_v38  ;;  %v2682_v37 = vpack.c.bf16 %v225_v30, %v223_v29  ;;  %v290_v38 = vld [vmem:[#allocation5 + $0xf8] sm:$0xff]  ;;  %v329_v29 = vld [vmem:[#allocation5 + $0x230] sm:$0xff] }
  0xa0   : > { %1093 = vmatprep.subr.bf16.mxu0 %v2170_v39  ;;  %1194 = vmatprep.subr.bf16.mxu1 %v2172_v40  ;;  %v228_v39 = vld [vmem:[%s2653_s30 + $0x48] sm:$0xff]  ;;  %v230_v40 = vld [vmem:[%s2653_s30 + $0x58] sm:$0xff]  ;;  %v2104_v44 = vcombine.high %v286_v36, %v290_v38 }
  0xa1   : > { %v244_v7 = vld [vmem:[%s2653_s30 + $0xc8] sm:$0xff] }
  0xa3   : > { %1094 = vmatpush1.bf16.msra.mxu0 %v2169_v45  ;;  %1195 = vmatpush1.bf16.msra.mxu1 %v2171_v46  ;;  %v293_v45 = vld [vmem:[#allocation5 + $0x110] sm:$0xff] }
  0xa4   : > { %1095 = vmatprep.subr.bf16.mxu0 %v2178_v47  ;;  %1196 = vmatprep.subr.bf16.mxu1 %v2180_v48  ;;  %v297_v46 = vld [vmem:[#allocation5 + $0x130] sm:$0xff]  ;;  %v2687_v47 = vpack.c.bf16 %v230_v40, %v228_v39  ;;  %v294_v48 = vld [vmem:[#allocation5 + $0x118] sm:$0xff] }
  0xa5   : > { %v333_v40 = vld [vmem:[#allocation5 + $0x250] sm:$0xff] }
  0xa7   : > { %1096 = vmatpush1.bf16.msra.mxu0 %v2177_v53  ;;  %1197 = vmatpush1.bf16.msra.mxu1 %v2179_v54  ;;  %v2103_v53 = vcombine.low %v286_v36, %v290_v38  ;;  %v2110_v54 = vcombine.high %v293_v45, %v297_v46 }
  0xa8   : > { %1097 = vmatprep.subr.bf16.mxu0 %v2186_v55  ;;  %1198 = vmatprep.subr.bf16.mxu1 %v2188_v56  ;;  %v2112_v55 = vcombine.high %v294_v48, %v298_v49  ;;  %v301_v56 = vld [vmem:[#allocation5 + $0x150] sm:$0xff] }
  0xa9   : > { %v2118_v2 = vcombine.high %v301_v56, %v305_v57 }
  0xab   : > { %1098 = vmatpush1.bf16.msra.mxu0 %v2185_v62  ;;  %1199 = vmatpush1.bf16.msra.mxu1 %v2187_v63  ;;  %v232_v62 = vld [vmem:[%s2653_s30 + $0x68] sm:$0xff]  ;;  %v234_v63 = vld [vmem:[%s2653_s30 + $0x78] sm:$0xff] }
  0xac   : > { %1099 = vmatprep.subr.bf16.mxu0 %v2194_v0  ;;  %1200 = vmatprep.subr.bf16.mxu1 %v2196_v1  ;;  %v2109_v0 = vcombine.low %v293_v45, %v297_v46  ;;  %v2111_v1 = vcombine.low %v294_v48, %v298_v49  ;;  %v240_v45 = vld [vmem:[%s2653_s30 + $0xa8] sm:$0xff]  ;;  %v242_v46 = vld [vmem:[%s2653_s30 + $0xb8] sm:$0xff] }
  0xaf   : > { %1100 = vmatpush1.bf16.msra.mxu0 %v2193_v6  ;;  %1201 = vmatpush1.bf16.msra.mxu1 %v2195_v9  ;;  %v2699_v6 = vpack.c.bf16 %v234_v63, %v232_v62  ;;  %v2117_v9 = vcombine.low %v301_v56, %v305_v57  ;;  %v346_v56 = vld [vmem:[#allocation5 + $0x2b8] sm:$0xff] }
  0xb0   : > { %1271 = vmatprep.subr.bf16.mxu0 %v2078_v10  ;;  %1372 = vmatprep.subr.bf16.mxu1 %v2080_v11  ;;  %v231_v10 = vld [vmem:[%s2653_s30 + $0x60] sm:$0xff]  ;;  %v233_v11 = vld [vmem:[%s2653_s30 + $0x70] sm:$0xff] }
  0xb2   : > { %1102 = vmatmul.mubr.bf16.vlgmr.msra.gmra.mrb[0].mxu0 %v2671_v15  ;;  %1203 = vmatmul.mubr.bf16.vlgmr.msra.gmra.mrb[0].mxu1 %v2671_v15 }
  0xb3   : > { %1272 = vmatpush1.bf16.msra.mxu0 %v2077_v19  ;;  %1373 = vmatpush1.bf16.msra.mxu1 %v2079_v20  ;;  %v2706_v19 = vpack.c.bf16 %v233_v11, %v231_v10  ;;  %v322_v20 = vld [vmem:[#allocation5 + $0x1f8] sm:$0xff]  ;;  %v2168_v11 = vcombine.high %v350_v4, %v354_v5 }
  0xb4   : > { %1273 = vmatprep.subr.bf16.mxu0 %v2086_v21  ;;  %1374 = vmatprep.subr.bf16.mxu1 %v2088_v22  ;;  %v236_v21 = vld [vmem:[%s2653_s30 + $0x88] sm:$0xff]  ;;  %v238_v22 = vld [vmem:[%s2653_s30 + $0x98] sm:$0xff]  ;;  %v2136_v27 = vcombine.high %v318_v18, %v322_v20  ;;  %v2135_v36 = vcombine.low %v318_v18, %v322_v20  ;;  %v243_v20 = vld [vmem:[%s2653_s30 + $0xc0] sm:$0xff] }
  0xb5   : > { %1111 = vmatprep.mubr.bf16.mxu0 %v2675_v25  ;;  %1212 = vmatprep.mubr.bf16.mxu1 %v2675_v25  ;;  %v2711_v30 = vpack.c.bf16 %v238_v22, %v236_v21  ;;  %v2167_v21 = vcombine.low %v350_v4, %v354_v5 }
  0xb7   : > { %1274 = vmatpush1.bf16.msra.mxu0 %v2085_v28  ;;  %1375 = vmatpush1.bf16.msra.mxu1 %v2087_v31  ;;  %v325_v28 = vld [vmem:[#allocation5 + $0x210] sm:$0xff]  ;;  %v326_v31 = vld [vmem:[#allocation5 + $0x218] sm:$0xff] }
  0xb8   : > { %1275 = vmatprep.subr.bf16.mxu0 %v2094_v32  ;;  %1376 = vmatprep.subr.bf16.mxu1 %v2096_v33  ;;  %v330_v32 = vld [vmem:[#allocation5 + $0x238] sm:$0xff]  ;;  %v2133_v33 = vcombine.low %v317_v16, %v321_v17  ;;  %v2142_v38 = vcombine.high %v325_v28, %v329_v29  ;;  %v2141_v48 = vcombine.low %v325_v28, %v329_v29 }
  0xb9   : > { %v2144_v39 = vcombine.high %v326_v31, %v330_v32  ;;  %v2143_v49 = vcombine.low %v326_v31, %v330_v32  ;;  %v358_v16 = vld [vmem:[#allocation5 + $0x318] sm:$0xff] }
  0xba   : > { %1112 = vmatmul.mubr.bf16.gmra.mrb[4].mxu0 %v2682_v37  ;;  %1213 = vmatmul.mubr.bf16.gmra.mrb[4].mxu1 %v2682_v37  ;;  %v362_v17 = vld [vmem:[#allocation5 + $0x338] sm:$0xff] }
  0xbb   : > { %1276 = vmatpush1.bf16.msra.mxu0 %v2093_v41  ;;  %1377 = vmatpush1.bf16.msra.mxu1 %v2095_v42  ;;  %v337_v41 = vld [vmem:[#allocation5 + $0x270] sm:$0xff]  ;;  %v334_v42 = vld [vmem:[#allocation5 + $0x258] sm:$0xff]  ;;  %v2175_v32 = vcombine.low %v358_v16, %v362_v17 }
  0xbc   : > { %1277 = vmatprep.subr.bf16.mxu0 %v2102_v43  ;;  %1378 = vmatprep.subr.bf16.mxu1 %v2104_v44  ;;  %v2718_v43 = vpack.c.bf16 %v237_v35, %v235_v34  ;;  %v338_v44 = vld [vmem:[#allocation5 + $0x278] sm:$0xff]  ;;  %v2149_v57 = vcombine.low %v333_v40, %v337_v41  ;;  %v373_v35 = vld [vmem:[#allocation5 + $0x390] sm:$0xff] }
  0xbd   : > { %1121 = vmatprep.mubr.bf16.mxu0 %v2687_v47  ;;  %1222 = vmatprep.mubr.bf16.mxu1 %v2687_v47  ;;  %v2152_v51 = vcombine.high %v334_v42, %v338_v44  ;;  %v2151_v62 = vcombine.low %v334_v42, %v338_v44  ;;  %v366_v28 = vld [vmem:[#allocation5 + $0x358] sm:$0xff] }
  0xbe   : > { %v370_v29 = vld [vmem:[#allocation5 + $0x378] sm:$0xff] }
  0xbf   : > { %1278 = vmatpush1.bf16.msra.mxu0 %v2101_v50  ;;  %1379 = vmatpush1.bf16.msra.mxu1 %v2103_v53  ;;  %v2150_v50 = vcombine.high %v333_v40, %v337_v41  ;;  %v345_v53 = vld [vmem:[#allocation5 + $0x2b0] sm:$0xff]  ;;  %v2184_v34 = vcombine.high %v366_v28, %v370_v29  ;;  %v2183_v41 = vcombine.low %v366_v28, %v370_v29 }
  0xc0   : > { %1279 = vmatprep.subr.bf16.mxu0 %v2110_v54  ;;  %1380 = vmatprep.subr.bf16.mxu1 %v2112_v55  ;;  %v2723_v54 = vpack.c.bf16 %v242_v46, %v240_v45  ;;  %v342_v55 = vld [vmem:[#allocation5 + $0x298] sm:$0xff]  ;;  %v2158_v63 = vcombine.high %v341_v52, %v345_v53  ;;  %v2157_v8 = vcombine.low %v341_v52, %v345_v53  ;;  %v381_v45 = vld [vmem:[#allocation5 + $0x3d0] sm:$0xff] }
  0xc1   : > { %v385_v46 = vld [vmem:[#allocation5 + $0x3f0] sm:$0xff] }
  0xc2   : > { %1122 = vmatmul.mubr.bf16.gmra.mrb[8].mxu0 %v2694_v60  ;;  %1223 = vmatmul.mubr.bf16.gmra.mrb[8].mxu1 %v2694_v60  ;;  %v2198_v52 = vcombine.high %v381_v45, %v385_v46 }
  0xc3   : > { %1280 = vmatpush1.bf16.msra.mxu0 %v2109_v0  ;;  %1381 = vmatpush1.bf16.msra.mxu1 %v2111_v1  ;;  %v2160_v0 = vcombine.high %v342_v55, %v346_v56  ;;  %v349_v1 = vld [vmem:[#allocation5 + $0x2d0] sm:$0xff] }
  0xc4   : > { %1281 = vmatprep.subr.bf16.mxu0 %v2118_v2  ;;  %1382 = vmatprep.subr.bf16.mxu1 %v2120_v3  ;;  %v353_v2 = vld [vmem:[#allocation5 + $0x2f0] sm:$0xff]  ;;  %v2730_v3 = vpack.c.bf16 %v241_v61, %v239_v59 }
  0xc5   : > { %1131 = vmatprep.mubr.bf16.mxu0 %v2699_v6  ;;  %1232 = vmatprep.mubr.bf16.mxu1 %v2699_v6  ;;  %v2166_v10 = vcombine.high %v349_v1, %v353_v2  ;;  %v2165_v18 = vcombine.low %v349_v1, %v353_v2 }
  0xc7   : > { %1282 = vmatpush1.bf16.msra.mxu0 %v2117_v9  ;;  %1383 = vmatpush1.bf16.msra.mxu1 %v2119_v12  ;;  %v2159_v9 = vcombine.low %v342_v55, %v346_v56  ;;  %v357_v12 = vld [vmem:[#allocation5 + $0x310] sm:$0xff]  ;;  %v2197_v55 = vcombine.low %v381_v45, %v385_v46 }
  0xc8   : > { %1283 = vmatprep.subr.bf16.mxu0 %v2126_v13  ;;  %1384 = vmatprep.subr.bf16.mxu1 %v2128_v14  ;;  %v361_v13 = vld [vmem:[#allocation5 + $0x330] sm:$0xff]  ;;  %v2734_v14 = vpack.c.bf16 %v244_v7, %v244_v7 }
  0xc9   : > { %v2174_v22 = vcombine.high %v357_v12, %v361_v13  ;;  %v2173_v31 = vcombine.low %v357_v12, %v361_v13 }
  0xca   : > { %1132 = vmatmul.mubr.bf16.gmra.mrb[12].mxu0 %v2706_v19  ;;  %1233 = vmatmul.mubr.bf16.gmra.mrb[12].mxu1 %v2706_v19 }
  0xcb   : > { %1284 = vmatpush1.bf16.msra.mxu0 %v2125_v23  ;;  %1385 = vmatpush1.bf16.msra.mxu1 %v2127_v24  ;;  %v2176_v23 = vcombine.high %v358_v16, %v362_v17  ;;  %v365_v24 = vld [vmem:[#allocation5 + $0x350] sm:$0xff] }
  0xcc   : > { %1285 = vmatprep.subr.bf16.mxu0 %v2134_v26  ;;  %1386 = vmatprep.subr.bf16.mxu1 %v2136_v27  ;;  %v369_v26 = vld [vmem:[#allocation5 + $0x370] sm:$0xff]  ;;  %v2740_v27 = vpack.c.bf16 %v243_v20, %v243_v20 }
  0xcd   : > { %1141 = vmatprep.mubr.bf16.mxu0 %v2711_v30  ;;  %1242 = vmatprep.mubr.bf16.mxu1 %v2711_v30  ;;  %v2181_v40 = vcombine.low %v365_v24, %v369_v26 }
  0xcf   : > { %1286 = vmatpush1.bf16.msra.mxu0 %v2133_v33  ;;  %1387 = vmatpush1.bf16.msra.mxu1 %v2135_v36  ;;  %v2182_v33 = vcombine.high %v365_v24, %v369_v26  ;;  %v377_v36 = vld [vmem:[#allocation5 + $0x3b0] sm:$0xff] }
  0xd0   : > { %1287 = vmatprep.subr.bf16.mxu0 %v2142_v38  ;;  %1388 = vmatprep.subr.bf16.mxu1 %v2144_v39  ;;  %v374_v38 = vld [vmem:[#allocation5 + $0x398] sm:$0xff]  ;;  %v2190_v42 = vcombine.high %v373_v35, %v377_v36 }
  0xd1   : > { %v378_v39 = vld [vmem:[#allocation5 + $0x3b8] sm:$0xff] }
  0xd2   : > { %1142 = vmatmul.mubr.bf16.gmra.mrb[16].mxu0 %v2718_v43  ;;  %1243 = vmatmul.mubr.bf16.gmra.mrb[16].mxu1 %v2718_v43  ;;  %v2192_v44 = vcombine.high %v374_v38, %v378_v39 }
  0xd3   : > { %1288 = vmatpush1.bf16.msra.mxu0 %v2141_v48  ;;  %1389 = vmatpush1.bf16.msra.mxu1 %v2143_v49  ;;  %v382_v48 = vld [vmem:[#allocation5 + $0x3d8] sm:$0xff] }
  0xd4   : > { %1289 = vmatprep.subr.bf16.mxu0 %v2150_v50  ;;  %1390 = vmatprep.subr.bf16.mxu1 %v2152_v51  ;;  %v386_v49 = vld [vmem:[#allocation5 + $0x3f8] sm:$0xff]  ;;  %v2189_v50 = vcombine.low %v373_v35, %v377_v36  ;;  %v2191_v51 = vcombine.low %v374_v38, %v378_v39 }
  0xd5   : > { %1151 = vmatprep.mubr.bf16.mxu0 %v2723_v54  ;;  %1252 = vmatprep.mubr.bf16.mxu1 %v2723_v54  ;;  %v2200_v53 = vcombine.high %v382_v48, %v386_v49  ;;  %v2199_v56 = vcombine.low %v382_v48, %v386_v49 }
  0xd7   : > { %1290 = vmatpush1.bf16.msra.mxu0 %v2149_v57  ;;  %1391 = vmatpush1.bf16.msra.mxu1 %v2151_v62 }
  0xd8   : > { %1291 = vmatprep.subr.bf16.mxu0 %v2158_v63  ;;  %1392 = vmatprep.subr.bf16.mxu1 %v2160_v0 }
  0xda   : > { %1152 = vmatmul.mubr.bf16.gmra.mrb[20].mxu0 %v2730_v3  ;;  %1253 = vmatmul.mubr.bf16.gmra.mrb[20].mxu1 %v2730_v3 }
  0xdb   : > { %1292 = vmatpush1.bf16.msra.mxu0 %v2157_v8  ;;  %1393 = vmatpush1.bf16.msra.mxu1 %v2159_v9  ;;  %v4240_v8 = vlaneseq }
  0xdc   : > { %1293 = vmatprep.subr.bf16.mxu0 %v2166_v10  ;;  %1394 = vmatprep.subr.bf16.mxu1 %v2168_v11 }
  0xdd   : > { %1161 = vmatprep.mubr.bf16.mxu0 %v2734_v14  ;;  %1262 = vmatprep.mubr.bf16.mxu1 %v2734_v14  ;;  %v2800_v10 = vshrl.u32 %v4240_v8, 7 }
  0xdf   : > { %1294 = vmatpush1.bf16.msra.mxu0 %v2165_v18  ;;  %1395 = vmatpush1.bf16.msra.mxu1 %v2167_v21  ;;  %v391_v20 = vsub.s32 0, %v2800_v10  ;;  %v395_v21 = vsub.s32 1, %v2800_v10  ;;  %v399_v24 = vsub.s32 2, %v2800_v10  ;;  %v403_v35 = vsub.s32 3, %v2800_v10 }
  0xe0   : > { %1295 = vmatprep.subr.bf16.mxu0 %v2174_v22  ;;  %1396 = vmatprep.subr.bf16.mxu1 %v2176_v23  ;;  %v2820_v23 = vld [vmem:[#allocation7] sm:$0xff] }
  0xe1   : > { %v2824_v26 = vrot.slane %v2820_v23, %v391_v20  ;;  %v2871_v49 = vrot.slane %v2820_v23, %v403_v35 }
  0xe2   : > { %1162 = vmatmul.mubr.bf16.gmra.mrb[24].mxu0 %v2740_v27  ;;  %1263 = vmatmul.mubr.bf16.gmra.mrb[24].mxu1 %v2740_v27 }
  0xe3   : > { %1296 = vmatpush1.bf16.msra.mxu0 %v2173_v31  ;;  %1397 = vmatpush1.bf16.msra.mxu1 %v2175_v32 }
  0xe4   : > { %1297 = vmatprep.subr.bf16.mxu0 %v2182_v33  ;;  %1398 = vmatprep.subr.bf16.mxu1 %v2184_v34  ;;  %v2840_v34 = vrot.slane %v2820_v23, %v399_v24 }
  0xe5   : > { %1303 = vmatprep.mubr.bf16.mxu0 %v2665_v58  ;;  %1404 = vmatprep.mubr.bf16.mxu1 %v2665_v58 }
  0xe7   : > { %1298 = vmatpush1.bf16.msra.mxu0 %v2181_v40  ;;  %1399 = vmatpush1.bf16.msra.mxu1 %v2183_v41 }
  0xe8   : > { %1299 = vmatprep.subr.bf16.mxu0 %v2190_v42  ;;  %1400 = vmatprep.subr.bf16.mxu1 %v2192_v44 }
  0xeb   : > { %1300 = vmatpush1.bf16.msra.mxu0 %v2189_v50  ;;  %1401 = vmatpush1.bf16.msra.mxu1 %v2191_v51 }
  0xec   : > { %1301 = vmatprep.subr.bf16.mxu0 %v2198_v52  ;;  %1402 = vmatprep.subr.bf16.mxu1 %v2200_v53 }
  0xef   : > { %1302 = vmatpush1.bf16.msra.mxu0 %v2197_v55  ;;  %1403 = vmatpush1.bf16.msra.mxu1 %v2199_v56 }
  0xf2   : > { %1304 = vmatmul.mubr.bf16.vlgmr.msra.gmra.mrb[28].mxu0 %v2671_v15  ;;  %1405 = vmatmul.mubr.bf16.vlgmr.msra.gmra.mrb[28].mxu1 %v2671_v15 }
  0xf3   : > { %1313 = vmatprep.mubr.bf16.mxu0 %v2675_v25  ;;  %1414 = vmatprep.mubr.bf16.mxu1 %v2675_v25 }
  0xfa   : > { %1314 = vmatmul.mubr.bf16.gmra.mrb[32].mxu0 %v2682_v37  ;;  %1415 = vmatmul.mubr.bf16.gmra.mrb[32].mxu1 %v2682_v37 }
  0xfb   : > { %1323 = vmatprep.mubr.bf16.mxu0 %v2687_v47  ;;  %1424 = vmatprep.mubr.bf16.mxu1 %v2687_v47 }
 0x102   : > { %1324 = vmatmul.mubr.bf16.gmra.mrb[36].mxu0 %v2694_v60  ;;  %1425 = vmatmul.mubr.bf16.gmra.mrb[36].mxu1 %v2694_v60 }
 0x103   : > { %1333 = vmatprep.mubr.bf16.mxu0 %v2699_v6  ;;  %1434 = vmatprep.mubr.bf16.mxu1 %v2699_v6 }
 0x10a   : > { %1334 = vmatmul.mubr.bf16.gmra.mrb[40].mxu0 %v2706_v19  ;;  %1435 = vmatmul.mubr.bf16.gmra.mrb[40].mxu1 %v2706_v19 }
 0x10b   : > { %1343 = vmatprep.mubr.bf16.mxu0 %v2711_v30  ;;  %1444 = vmatprep.mubr.bf16.mxu1 %v2711_v30 }
 0x112   : > { %1344 = vmatmul.mubr.bf16.gmra.mrb[44].mxu0 %v2718_v43  ;;  %1445 = vmatmul.mubr.bf16.gmra.mrb[44].mxu1 %v2718_v43 }
 0x113   : > { %1353 = vmatprep.mubr.bf16.mxu0 %v2723_v54  ;;  %1454 = vmatprep.mubr.bf16.mxu1 %v2723_v54 }
 0x11a   : > { %1354 = vmatmul.mubr.bf16.gmra.mrb[48].mxu0 %v2730_v3  ;;  %1455 = vmatmul.mubr.bf16.gmra.mrb[48].mxu1 %v2730_v3 }
 0x11b   : > { %1363 = vmatprep.mubr.bf16.mxu0 %v2734_v14  ;;  %1464 = vmatprep.mubr.bf16.mxu1 %v2734_v14 }
 0x122   : > { %1364 = vmatmul.mubr.bf16.gmra.mrb[52].mxu0 %v2740_v27  ;;  %1465 = vmatmul.mubr.bf16.gmra.mrb[52].mxu1 %v2740_v27  ;;  %v2827_v27 = vrot.slane %v2820_v23, %v395_v21 }
 0x185   : > { %v1103_v58 = vpop.f32.mrb[0].mxu0  ;;  %v1204_v25 = vpop.f32.mrb[0].mxu1 }
 0x186   : > { %v1105_v15 = vpop.f32.mrb[1].mxu0  ;;  %v2773_v47 = vpop.f32.mrb[1].mxu1  ;;  %v2848_v39 = vadd.f32 %v1103_v58, %v2824_v26  ;;  %v2868_v48 = vadd.f32 %v1204_v25, %v2840_v34 }
 0x187   : > { %v1107_v37 = vpop.f32.mrb[2].mxu0  ;;  %v1208_v6 = vpop.f32.mrb[2].mxu1  ;;  %v2851_v40 = vadd.f32 %v1105_v15, %v2827_v27 }
 0x188   : > { %v1109_v60 = vpop.f32.mrb[3].mxu0  ;;  %v2775_v19 = vpop.f32.mrb[3].mxu1  ;;  %4348 = vst [vmem:[#allocation12_spill] sm:$0xff] %v2848_v39  ;;  %v2856_v42 = vadd.f32 %v1107_v37, %v2824_v26  ;;  %4354 = vst [vmem:[#allocation18_spill] sm:$0xff] %v2868_v48  ;;  %v4243_v50 = vmax.f32 %v2848_v39, 0.0  ;;  %v2886_v15 = vadd.f32 %v1208_v6, %v2840_v34  ;;  %v2904_v6 = vadd.f32 %v2773_v47, %v2871_v49 }
 0x189   : > { %4349 = vst [vmem:[#allocation13_spill] sm:$0xff] %v2851_v40  ;;  %v2859_v44 = vadd.f32 %v1109_v60, %v2827_v27  ;;  %v4242_v51 = vmax.f32 %v2851_v40, 0.0  ;;  %v407_v40 = vsub.s32 4, %v2800_v10 }
 0x18a   : > { %4350 = vst [vmem:[#allocation14_spill] sm:$0xff] %v2856_v42  ;;  %v4247_v56 = vmax.f32 %v2856_v42, 0.0  ;;  %4357 = vst [vmem:[#allocation21_spill] sm:$0xff] %v2886_v15 }
 0x18b   : > { %4351 = vst [vmem:[#allocation15_spill] sm:$0xff] %v2859_v44  ;;  %v4246_v58 = vmax.f32 %v2859_v44, 0.0  ;;  %v415_v44 = vsub.s32 6, %v2800_v10 }
 0x18d   : > { %v1113_v30 = vpop.f32.mrb[4].mxu0  ;;  %v1214_v54 = vpop.f32.mrb[4].mxu1  ;;  %v1578_v47 = vmax.f32 %v4247_v56, %v4246_v58  ;;  %v2942_v56 = vadd.f32 %v2775_v19, %v2871_v49  ;;  %v4367_v19 = vmax.f32 %v2886_v15, 0.0 }
 0x18e   : > { %v1115_v43 = vpop.f32.mrb[5].mxu0  ;;  %v2777_v59 = vpop.f32.mrb[5].mxu1  ;;  %v2862_v45 = vadd.f32 %v1113_v30, %v2824_v26  ;;  %v419_v30 = vsub.s32 7, %v2800_v10 }
 0x18f   : > { %v1117_v57 = vpop.f32.mrb[6].mxu0  ;;  %v2779_v62 = vpop.f32.mrb[6].mxu1  ;;  %v2865_v46 = vadd.f32 %v1115_v43, %v2827_v27  ;;  %v2895_v43 = vadd.f32 %v1214_v54, %v2840_v34  ;;  %v1577_v54 = vmax.f32 %v4243_v50, %v4242_v51  ;;  %v411_v51 = vsub.s32 5, %v2800_v10 }
 0x190   : > { %v1119_v61 = vpop.f32.mrb[7].mxu0  ;;  %v2781_v63 = vpop.f32.mrb[7].mxu1  ;;  %4352 = vst [vmem:[#allocation16_spill] sm:$0xff] %v2862_v45  ;;  %v2876_v52 = vadd.f32 %v1117_v57, %v2824_v26  ;;  %v2918_v20 = vadd.f32 %v2779_v62, %v2840_v34  ;;  %v4362_v35 = vmax.f32 %v2862_v45, 0.0  ;;  %v2936_v39 = vadd.f32 %v2777_v59, %v2871_v49 }
 0x191   : > { %4353 = vst [vmem:[#allocation17_spill] sm:$0xff] %v2865_v46  ;;  %v2879_v53 = vadd.f32 %v1119_v61, %v2827_v27  ;;  %4358 = vst [vmem:[#allocation22_spill] sm:$0xff] %v2895_v43  ;;  %v4361_v50 = vmax.f32 %v2865_v46, 0.0  ;;  %v4363_v46 = vmax.f32 %v2868_v48, 0.0  ;;  %v2954_v42 = vadd.f32 %v2781_v63, %v2871_v49 }
 0x192   : > { %4355 = vst [vmem:[#allocation19_spill] sm:$0xff] %v2876_v52  ;;  %4359 = vst [vmem:[#allocation23_spill] sm:$0xff] %v2918_v20  ;;  %v4374_v63 = vmax.f32 %v2904_v6, 0.0  ;;  %v3003_v15 = vrot.slane %v2820_v23, %v419_v30 }
 0x193   : > { %4356 = vst [vmem:[#allocation20_spill] sm:$0xff] %v2879_v53  ;;  %v1579_v8 = vmax.f32 %v4362_v35, %v4361_v50  ;;  %v1590_v45 = vmax.f32 %v1577_v54, %v4363_v46  ;;  %v4364_v50 = vmax.f32 %v2879_v53, 0.0  ;;  %v4365_v35 = vmax.f32 %v2876_v52, 0.0  ;;  %4366 = vst [vmem:[#allocation25_spill] sm:$0xff] %v2954_v42 }
 0x194   : > { %v2965_v46 = vrot.slane %v2820_v23, %v407_v40  ;;  %v2968_v54 = vrot.slane %v2820_v23, %v411_v51  ;;  %v2980_v53 = vrot.slane %v2820_v23, %v415_v44  ;;  %v4375_v40 = vmax.f32 %v2918_v20, 0.0 }
 0x195   : > { %v2783_v0 = vpop.f32.mrb[8].mxu0  ;;  %v2787_v2 = vpop.f32.mrb[8].mxu1  ;;  %v1580_v62 = vmax.f32 %v4365_v35, %v4364_v50  ;;  %v4368_v50 = vmax.f32 %v2895_v43, 0.0  ;;  %v2997_v44 = vmax.f32 %v1590_v45, %v4374_v63 }
 0x196   : > { %v2785_v1 = vpop.f32.mrb[9].mxu0  ;;  %v2791_v4 = vpop.f32.mrb[9].mxu1  ;;  %v2975_v59 = vadd.f32 %v2783_v0, %v2824_v26 }
 0x197   : > { %v2789_v3 = vpop.f32.mrb[10].mxu0  ;;  %v2795_v7 = vpop.f32.mrb[10].mxu1  ;;  %v1592_v35 = vmax.f32 %v1579_v8, %v4368_v50  ;;  %v2985_v51 = vadd.f32 %v2785_v1, %v2827_v27  ;;  %v1593_v52 = vmax.f32 %v1580_v62, %v4375_v40  ;;  %v4256_v1 = vmax.f32 %v2954_v42, 0.0 }
 0x198   : > { %v2793_v5 = vpop.f32.mrb[11].mxu0  ;;  %v2797_v9 = vpop.f32.mrb[11].mxu1  ;;  %4369 = vst [vmem:[#allocation26_spill] sm:$0xff] %v2975_v59  ;;  %v2989_v8 = vadd.f32 %v2789_v3, %v2824_v26  ;;  %v4376_v3 = vmax.f32 %v2942_v56, 0.0  ;;  %v4260_v30 = vmax.f32 %v2975_v59, 0.0 }
 0x199   : > { %4371 = vst [vmem:[#allocation28_spill] sm:$0xff] %v2985_v51  ;;  %v2993_v0 = vadd.f32 %v2793_v5, %v2827_v27  ;;  %v3011_v5 = vadd.f32 %v2787_v2, %v2840_v34  ;;  %v3043_v40 = vmax.f32 %v1593_v52, %v4256_v1 }
 0x19a   : > { %4372 = vst [vmem:[#allocation29_spill] sm:$0xff] %v2989_v8  ;;  %v4259_v63 = vmax.f32 %v2989_v8, 0.0 }
 0x19b   : > { %4373 = vst [vmem:[#allocation30_spill] sm:$0xff] %v2993_v0  ;;  %4377 = vst [vmem:[#allocation31_spill] sm:$0xff] %v3011_v5 }
 0x19d   : > { %v2802_v11 = vpop.f32.mrb[12].mxu0  ;;  %v2806_v13 = vpop.f32.mrb[12].mxu1 }
 0x19e   : > { %v2804_v12 = vpop.f32.mrb[13].mxu0  ;;  %v2810_v16 = vpop.f32.mrb[13].mxu1  ;;  %v3015_v45 = vadd.f32 %v2802_v11, %v2824_v26  ;;  %v4257_v11 = vmax.f32 %v2985_v51, 0.0  ;;  %v3062_v52 = vadd.f32 %v2806_v13, %v2840_v34 }
 0x19f   : > { %v2808_v14 = vpop.f32.mrb[14].mxu0  ;;  %v2814_v18 = vpop.f32.mrb[14].mxu1  ;;  %v3019_v62 = vadd.f32 %v2804_v12, %v2827_v27  ;;  %v4258_v12 = vmax.f32 %v2993_v0, 0.0 }
 0x1a0   : > { %v2812_v17 = vpop.f32.mrb[15].mxu0  ;;  %v2818_v22 = vpop.f32.mrb[15].mxu1  ;;  %4378 = vst [vmem:[#allocation32_spill] sm:$0xff] %v3015_v45  ;;  %4387 = vst [vmem:[#allocation40_spill] sm:$0xff] %v3062_v52  ;;  %v1581_v1 = vmax.f32 %v4260_v30, %v4257_v11 }
 0x1a1   : > { %4379 = vst [vmem:[#allocation33_spill] sm:$0xff] %v3019_v62  ;;  %v3032_v2 = vadd.f32 %v2812_v17, %v2827_v27  ;;  %v1582_v13 = vmax.f32 %v4259_v63, %v4258_v12  ;;  %v3104_v63 = vadd.f32 %v2810_v16, %v2871_v49  ;;  %v3108_v30 = vadd.f32 %v2818_v22, %v2871_v49 }
 0x1a2   : > { %v4398_v16 = vmax.f32 %v3011_v5, 0.0 }
 0x1a3   : > { %4382 = vst [vmem:[#allocation35_spill] sm:$0xff] %v3032_v2  ;;  %4393 = vst [vmem:[#allocation46_spill] sm:$0xff] %v3104_v63 }
 0x1a4   : > { %4394 = vst [vmem:[#allocation47_spill] sm:$0xff] %v3108_v30 }
 0x1a5   : > { %v2829_v28 = vpop.f32.mrb[16].mxu0  ;;  %v2833_v31 = vpop.f32.mrb[16].mxu1 }
 0x1a6   : > { %v2831_v29 = vpop.f32.mrb[17].mxu0  ;;  %v2837_v33 = vpop.f32.mrb[17].mxu1  ;;  %v3051_v17 = vadd.f32 %v2829_v28, %v2824_v26 }
 0x1a7   : > { %v2835_v32 = vpop.f32.mrb[18].mxu0  ;;  %v2845_v38 = vpop.f32.mrb[18].mxu1 }
 0x1a8   : > { %v2843_v36 = vpop.f32.mrb[19].mxu0  ;;  %v2853_v41 = vpop.f32.mrb[19].mxu1  ;;  %4385 = vst [vmem:[#allocation38_spill] sm:$0xff] %v3051_v17 }
 0x1a9   : > { %v3095_v11 = vadd.f32 %v2843_v36, %v2827_v27  ;;  %v4395_v36 = vmax.f32 %v3032_v2, 0.0 }
 0x1ab   : > { %4392 = vst [vmem:[#allocation45_spill] sm:$0xff] %v3095_v11 }
 0x1ad   : > { %v2881_v55 = vpop.f32.mrb[20].mxu0  ;;  %v2890_v37 = vpop.f32.mrb[20].mxu1 }
 0x1ae   : > { %v2888_v25 = vpop.f32.mrb[21].mxu0  ;;  %v2899_v61 = vpop.f32.mrb[21].mxu1 }
 0x1af   : > { %v2897_v57 = vpop.f32.mrb[22].mxu0  ;;  %v2908_v24 = vpop.f32.mrb[22].mxu1 }
 0x1b0   : > { %v2906_v21 = vpop.f32.mrb[23].mxu0  ;;  %v2920_v60 = vpop.f32.mrb[23].mxu1 }
 0x1b1   : > { %4360 = vst [vmem:[#allocation24_spill] sm:$0xff] %v2920_v60  ;;  %v1591_v60 = vmax.f32 %v1578_v47, %v4367_v19 }
 0x1b5   : > { %v2956_v58 = vpop.f32.mrb[24].mxu0  ;;  %v2962_v48 = vpop.f32.mrb[24].mxu1 }
 0x1b6   : > { %v2960_v10 = vpop.f32.mrb[25].mxu0  ;;  %v2977_v19 = vpop.f32.mrb[25].mxu1 }
 0x1b7   : > { %v1167_v47 = vpop.f32.mrb[26].mxu0  ;;  %4370 = vst [vmem:[#allocation27_spill] sm:$0xff] %v2977_v19  ;;  %v3007_v19 = vmax.f32 %v1591_v60, %v4376_v3  ;;  %v3028_v60 = vadd.f32 %v2808_v14, %v2824_v26  ;;  %v3047_v14 = vadd.f32 %v2791_v4, %v2871_v49  ;;  %v4261_v3 = vmax.f32 %v3019_v62, 0.0 }
 0x1b8   : > { %v1168_v50 = vpop.f32.mrb[27].mxu0  ;;  %v1268_v47 = vpop.f32.mrb[26].mxu1  ;;  %v3066_v4 = vadd.f32 %v2797_v9, %v2871_v49 }
 0x1b9   : > { %v1269_v43 = vpop.f32.mrb[27].mxu1  ;;  %4381 = vst [vmem:[#allocation34_spill] sm:$0xff] %v3028_v60  ;;  %4384 = vst [vmem:[#allocation37_spill] sm:$0xff] %v3047_v14  ;;  %v3055_v50 = vadd.f32 %v2831_v29, %v2827_v27  ;;  %v3072_v29 = vadd.f32 %v2814_v18, %v2840_v34  ;;  %v3085_v47 = vadd.f32 %v2833_v31, %v2840_v34  ;;  %v4396_v28 = vmax.f32 %v3028_v60, 0.0 }
 0x1ba   : > { %v4380_v43 = vmax.f32 %v2936_v39, 0.0  ;;  %4388 = vst [vmem:[#allocation41_spill] sm:$0xff] %v3066_v4  ;;  %v4409_v62 = vmax.f32 %v3047_v14, 0.0  ;;  %v4410_v0 = vmax.f32 %v3066_v4, 0.0 }
 0x1bb   : > { %4386 = vst [vmem:[#allocation39_spill] sm:$0xff] %v3055_v50  ;;  %4389 = vst [vmem:[#allocation42_spill] sm:$0xff] %v3072_v29  ;;  %v1584_v18 = vmax.f32 %v4396_v28, %v4395_v36  ;;  %v4401_v28 = vmax.f32 %v3055_v50, 0.0  ;;  %v4402_v36 = vmax.f32 %v3051_v17, 0.0 }
 0x1bc   : > { %v3023_v23 = vmax.f32 %v1592_v35, %v4380_v43  ;;  %v3039_v35 = vadd.f32 %v2795_v7, %v2840_v34  ;;  %v4262_v7 = vmax.f32 %v3015_v45, 0.0  ;;  %4390 = vst [vmem:[#allocation43_spill] sm:$0xff] %v3085_v47  ;;  %v3091_v43 = vadd.f32 %v2835_v32, %v2824_v26 }
 0x1bd   : > { %v3127_v32 = vadd.f32 %v2845_v38, %v2840_v34  ;;  %v1585_v9 = vmax.f32 %v4402_v36, %v4401_v28  ;;  %v4404_v28 = vmax.f32 %v3072_v29, 0.0 }
 0x1be   : > { %4383 = vst [vmem:[#allocation36_spill] sm:$0xff] %v3039_v35  ;;  %4391 = vst [vmem:[#allocation44_spill] sm:$0xff] %v3091_v43  ;;  %v1583_v12 = vmax.f32 %v4262_v7, %v4261_v3  ;;  %v3118_v3 = vadd.f32 %v2837_v33, %v2871_v49  ;;  %v1594_v7 = vmax.f32 %v1581_v1, %v4398_v16  ;;  %v4399_v31 = vmax.f32 %v3039_v35, 0.0 }
 0x1bf   : > { %4400 = vst [vmem:[#allocation49_spill] sm:$0xff] %v3127_v32  ;;  %v1597_v36 = vmax.f32 %v1584_v18, %v4404_v28 }
 0x1c0   : > { %4397 = vst [vmem:[#allocation48_spill] sm:$0xff] %v3118_v3  ;;  %v1595_v22 = vmax.f32 %v1582_v13, %v4399_v31  ;;  %v4403_v13 = vmax.f32 %v3062_v52, 0.0  ;;  %v4408_v52 = vmax.f32 %v3085_v47, 0.0 }
 0x1c2   : > { %v1596_v31 = vmax.f32 %v1583_v12, %v4403_v13  ;;  %v1598_v45 = vmax.f32 %v1585_v9, %v4408_v52  ;;  %v3177_v8 = vmax.f32 %v1595_v22, %v4410_v0  ;;  %v4412_v9 = vmax.f32 %v3104_v63, 0.0 }
 0x1c3   : > { %v3195_v0 = vadd.f32 %v2881_v55, %v2824_v26 }
 0x1c5   : > { %v1305_v16 = vpop.f32.mrb[28].mxu0  ;;  %v1406_v17 = vpop.f32.mrb[28].mxu1  ;;  %4414 = vst [vmem:[#allocation51_spill] sm:$0xff] %v3195_v0 }
 0x1c6   : > { %v3141_v60 = vadd.f32 %v1305_v16, %v2965_v46  ;;  %v1307_v50 = vpop.f32.mrb[29].mxu0  ;;  %v3150_v2 = vadd.f32 %v1406_v17, %v2980_v53  ;;  %v1408_v13 = vpop.f32.mrb[29].mxu1  ;;  %v3155_v16 = vadd.f32 %v2853_v41, %v2871_v49  ;;  %v4407_v17 = vmax.f32 %v3091_v43, 0.0 }
 0x1c7   : > { %v3147_v1 = vadd.f32 %v1307_v50, %v2968_v54  ;;  %v1309_v12 = vpop.f32.mrb[30].mxu0  ;;  %v1410_v33 = vpop.f32.mrb[30].mxu1  ;;  %v4406_v50 = vmax.f32 %v3095_v11, 0.0 }
 0x1c8   : > { %4405 = vst [vmem:[#allocation50_spill] sm:$0xff] %v3155_v16  ;;  %v3159_v18 = vadd.f32 %v1309_v12, %v2965_v46  ;;  %v1311_v28 = vpop.f32.mrb[31].mxu0  ;;  %v1412_v35 = vpop.f32.mrb[31].mxu1  ;;  %v3173_v12 = vmax.f32 %v1594_v7, %v4409_v62  ;;  %v4411_v11 = vmax.f32 %v3141_v60, 0.0  ;;  %v3215_v7 = vadd.f32 %v1408_v13, %v3003_v15 }
 0x1c9   : > { %v1586_v29 = vmax.f32 %v4407_v17, %v4406_v50  ;;  %v3169_v41 = vadd.f32 %v1311_v28, %v2968_v54  ;;  %v3185_v17 = vmax.f32 %v1596_v31, %v4412_v9  ;;  %v4413_v28 = vmax.f32 %v3108_v30, 0.0 }
 0x1ca   : > { %v1616_v50 = vmax.f32 %v2997_v44, %v4411_v11  ;;  %v4275_v52 = vmax.f32 %v3159_v18, 0.0  ;;  %v4415_v44 = vmax.f32 %v3147_v1, 0.0  ;;  %v3203_v31 = vadd.f32 %v1410_v33, %v2980_v53 }
 0x1cb   : > { %v3189_v38 = vmax.f32 %v1597_v36, %v4413_v28  ;;  %v4416_v36 = vmax.f32 %v3118_v3, 0.0  ;;  %v4417_v28 = vmax.f32 %v3127_v32, 0.0  ;;  %v3223_v33 = vadd.f32 %v2890_v37, %v2840_v34 }
 0x1cc   : > { %v1629_v11 = vmax.f32 %v1616_v50, %v4415_v44  ;;  %v1617_v22 = vmax.f32 %v3007_v19, %v4275_v52  ;;  %v3219_v19 = vadd.f32 %v2888_v25, %v2827_v27  ;;  %v4421_v13 = vmax.f32 %v3150_v2, 0.0 }
 0x1cd   : > { %v3207_v9 = vmax.f32 %v1598_v45, %v4416_v36  ;;  %v3211_v62 = vmax.f32 %v1586_v29, %v4417_v28  ;;  %v1315_v50 = vpop.f32.mrb[32].mxu0  ;;  %4419 = vst [vmem:[#allocation53_spill] sm:$0xff] %v3223_v33  ;;  %v4420_v45 = vmax.f32 %v3169_v41, 0.0  ;;  %v1416_v28 = vpop.f32.mrb[32].mxu1  ;;  %v3233_v55 = vadd.f32 %v1412_v35, %v3003_v15 }
 0x1ce   : > { %4418 = vst [vmem:[#allocation52_spill] sm:$0xff] %v3219_v19  ;;  %v3228_v29 = vadd.f32 %v1315_v50, %v2965_v46  ;;  %v1317_v36 = vpop.f32.mrb[33].mxu0  ;;  %v1642_v52 = vmax.f32 %v1629_v11, %v4421_v13  ;;  %v3239_v37 = vadd.f32 %v1416_v28, %v2980_v53  ;;  %v1418_v43 = vpop.f32.mrb[33].mxu1  ;;  %v4285_v50 = vmax.f32 %v3203_v31, 0.0 }
 0x1cf   : > { %v1630_v44 = vmax.f32 %v1617_v22, %v4420_v45  ;;  %v3236_v25 = vadd.f32 %v1317_v36, %v2968_v54  ;;  %v1319_v32 = vpop.f32.mrb[34].mxu0  ;;  %v1420_v35 = vpop.f32.mrb[34].mxu1  ;;  %v3249_v36 = vadd.f32 %v2897_v57, %v2824_v26  ;;  %v3258_v45 = vadd.f32 %v2906_v21, %v2827_v27 }
 0x1d0   : > { %v3245_v3 = vadd.f32 %v1319_v32, %v2965_v46  ;;  %v1321_v11 = vpop.f32.mrb[35].mxu0  ;;  %v1422_v22 = vpop.f32.mrb[35].mxu1  ;;  %v4426_v30 = vmax.f32 %v3228_v29, 0.0  ;;  %v4288_v28 = vmax.f32 %v3233_v55, 0.0  ;;  %v4291_v13 = vmax.f32 %v3239_v37, 0.0 }
 0x1d1   : > { %4423 = vst [vmem:[#allocation55_spill] sm:$0xff] %v3249_v36  ;;  %v3254_v47 = vadd.f32 %v1321_v11, %v2968_v54  ;;  %4425 = vst [vmem:[#allocation57_spill] sm:$0xff] %v3258_v45  ;;  %v1643_v32 = vmax.f32 %v1630_v44, %v4285_v50  ;;  %v4427_v4 = vmax.f32 %v3215_v7, 0.0  ;;  %v4428_v21 = vmax.f32 %v3236_v25, 0.0 }
 0x1d2   : > { %4422 = vst [vmem:[#allocation54_spill] sm:$0xff] %v3245_v3  ;;  %v1618_v57 = vmax.f32 %v3023_v23, %v4426_v30  ;;  %v4286_v63 = vmax.f32 %v3245_v3, 0.0  ;;  %v3279_v23 = vadd.f32 %v1418_v43, %v3003_v15  ;;  %v3282_v30 = vadd.f32 %v1420_v35, %v2980_v53 }
 0x1d3   : > { %4424 = vst [vmem:[#allocation56_spill] sm:$0xff] %v3254_v47  ;;  %v3271_v14 = vmax.f32 %v1642_v52, %v4427_v4  ;;  %v3289_v52 = vadd.f32 %v2899_v61, %v2871_v49  ;;  %v3296_v35 = vadd.f32 %v2908_v24, %v2840_v34  ;;  %v4433_v11 = vmax.f32 %v3254_v47, 0.0 }
 0x1d4   : > { %v1631_v5 = vmax.f32 %v1618_v57, %v4428_v21  ;;  %v1619_v44 = vmax.f32 %v3043_v40, %v4286_v63  ;;  %4429 = vst [vmem:[#allocation58_spill] sm:$0xff] %v3282_v30  ;;  %v3300_v57 = vmax.f32 %v1643_v32, %v4288_v28  ;;  %v4438_v47 = vmax.f32 %v3282_v30, 0.0 }
 0x1d5   : > { %4430 = vst [vmem:[#allocation59_spill] sm:$0xff] %v3289_v52  ;;  %1668 = vrot.lane.b32.xlu0 %v3271_v14, %s2453_s18  ;;  %v1325_v40 = vpop.f32.mrb[36].mxu0  ;;  %4431 = vst [vmem:[#allocation60_spill] sm:$0xff] %v3296_v35  ;;  %v1426_v63 = vpop.f32.mrb[36].mxu1  ;;  %v4440_v20 = vmax.f32 %v3279_v23, 0.0  ;;  %v4447_v30 = vmax.f32 %v3258_v45, 0.0 }
 0x1d6   : > { %v3303_v21 = vadd.f32 %v1325_v40, %v2965_v46  ;;  %v1327_v61 = vpop.f32.mrb[37].mxu0  ;;  %v1644_v4 = vmax.f32 %v1631_v5, %v4291_v13  ;;  %v1632_v50 = vmax.f32 %v1619_v44, %v4433_v11  ;;  %v3313_v24 = vadd.f32 %v1426_v63, %v2980_v53  ;;  %v1428_v32 = vpop.f32.mrb[37].mxu1 }
 0x1d7   : > { %v3310_v43 = vadd.f32 %v1327_v61, %v2968_v54  ;;  %v1329_v51 = vpop.f32.mrb[38].mxu0  ;;  %v1430_v13 = vpop.f32.mrb[38].mxu1  ;;  %v3322_v11 = vadd.f32 %v1422_v22, %v3003_v15  ;;  %v3328_v63 = vadd.f32 %v1428_v32, %v3003_v15 }
 0x1d8   : > { %4432 = vst [vmem:[#allocation61_spill] sm:$0xff] %v3303_v21  ;;  %v4296_v59 = vmax.f32 %v3303_v21, 0.0  ;;  %v3319_v3 = vadd.f32 %v1329_v51, %v2965_v46  ;;  %v1331_v5 = vpop.f32.mrb[39].mxu0  ;;  %v1432_v28 = vpop.f32.mrb[39].mxu1  ;;  %v3339_v44 = vadd.f32 %v1430_v13, %v2980_v53  ;;  %v1645_v42 = vmax.f32 %v1632_v50, %v4438_v47  ;;  %v4443_v13 = vld [vmem:[#allocation24_spill] sm:$0xff] }
 0x1d9   : > { %1670 = vrot.lane.b32.xlu0 %v3300_v57, %s2453_s18  ;;  %4435 = vst [vmem:[#allocation63_spill] sm:$0xff] %v3328_v63  ;;  %v3331_v61 = vadd.f32 %v1331_v5, %v2968_v54  ;;  %v3345_v5 = vadd.f32 %v1432_v28, %v3003_v15  ;;  %v3349_v21 = vmax.f32 %v1644_v4, %v4440_v20  ;;  %v4445_v47 = vmax.f32 %v3310_v43, 0.0 }
 0x1da   : > { %4434 = vst [vmem:[#allocation62_spill] sm:$0xff] %v3319_v3  ;;  %v1620_v51 = vmax.f32 %v3173_v12, %v4296_v59  ;;  %4437 = vst [vmem:[#allocation65_spill] sm:$0xff] %v3339_v44  ;;  %v4441_v12 = vmax.f32 %v3219_v19, 0.0  ;;  %v4442_v59 = vmax.f32 %v3195_v0, 0.0  ;;  %v3357_v22 = vadd.f32 %v4443_v13, %v2871_v49 }
 0x1db   : > { %4436 = vst [vmem:[#allocation64_spill] sm:$0xff] %v3331_v61  ;;  %4439 = vst [vmem:[#allocation66_spill] sm:$0xff] %v3345_v5  ;;  %v4446_v32 = vmax.f32 %v3319_v3, 0.0  ;;  %v4448_v20 = vmax.f32 %v3249_v36, 0.0  ;;  %1672 = vrot.lane.b32.xlu1 %v3349_v21, %s2453_s18  ;;  %v4305_v45 = vmax.f32 %v3339_v44, 0.0 }
 0x1dc   : > { %v1587_v40 = vmax.f32 %v4442_v59, %v4441_v12  ;;  %4444 = vst [vmem:[#allocation24_spill] sm:$0xff] %v3357_v22  ;;  %v1633_v50 = vmax.f32 %v1620_v51, %v4445_v47  ;;  %v4303_v59 = vmax.f32 %v3322_v11, 0.0  ;;  %v4449_v51 = vmax.f32 %v3313_v24, 0.0 }
 0x1dd   : > { %v1621_v28 = vmax.f32 %v3177_v8, %v4446_v32  ;;  %v1588_v4 = vmax.f32 %v4448_v20, %v4447_v30  ;;  %v1335_v13 = vpop.f32.mrb[40].mxu0  ;;  %v4450_v8 = vmax.f32 %v3331_v61, 0.0  ;;  %v1436_v19 = vpop.f32.mrb[40].mxu1 }
 0x1de   : > { %v1646_v47 = vmax.f32 %v1633_v50, %v4449_v51  ;;  %v3379_v30 = vadd.f32 %v1335_v13, %v2965_v46  ;;  %v1337_v20 = vpop.f32.mrb[41].mxu0  ;;  %v3383_v12 = vmax.f32 %v1645_v42, %v4303_v59  ;;  %v3390_v50 = vadd.f32 %v1436_v19, %v2980_v53  ;;  %v1438_v51 = vpop.f32.mrb[41].mxu1 }
 0x1df   : > { %v1634_v32 = vmax.f32 %v1621_v28, %v4450_v8  ;;  %v3387_v0 = vadd.f32 %v1337_v20, %v2968_v54  ;;  %v1339_v28 = vpop.f32.mrb[42].mxu0  ;;  %v4452_v8 = vmax.f32 %v3328_v63, 0.0  ;;  %v1440_v20 = vpop.f32.mrb[42].mxu1 }
 0x1e0   : > { %4451 = vst [vmem:[#allocation67_spill] sm:$0xff] %v3379_v30  ;;  %v4308_v42 = vmax.f32 %v3379_v30, 0.0  ;;  %v3400_v59 = vadd.f32 %v1339_v28, %v2965_v46  ;;  %v1341_v36 = vpop.f32.mrb[43].mxu0  ;;  %1674 = vrot.lane.b32.xlu1 %v3383_v12, %s2453_s18  ;;  %v3421_v44 = vadd.f32 %v1440_v20, %v2980_v53 }
 0x1e1   : > { %v3394_v13 = vmax.f32 %v1646_v47, %v4452_v8  ;;  %v1647_v61 = vmax.f32 %v1634_v32, %v4305_v45  ;;  %v3407_v47 = vadd.f32 %v1438_v51, %v3003_v15  ;;  %v3410_v8 = vadd.f32 %v1341_v36, %v2968_v54  ;;  %v1442_v32 = vpop.f32.mrb[43].mxu1 }
 0x1e2   : > { %v4453_v45 = vmax.f32 %v3345_v5, 0.0  ;;  %v1622_v3 = vmax.f32 %v3185_v17, %v4308_v42  ;;  %v4454_v36 = vmax.f32 %v3155_v16, 0.0  ;;  %v4456_v17 = vmax.f32 %v3223_v33, 0.0 }
 0x1e3   : > { %1676 = vrot.lane.b32.xlu0 %v3394_v13, %s2453_s18  ;;  %v4457_v19 = vmax.f32 %v3387_v0, 0.0  ;;  %v4458_v63 = vmax.f32 %v3400_v59, 0.0  ;;  %v3445_v5 = vadd.f32 %v2956_v58, %v2824_v26 }
 0x1e4   : > { %v3414_v28 = vmax.f32 %v1647_v61, %v4453_v45  ;;  %v1612_v51 = vmax.f32 %v3211_v62, %v4454_v36  ;;  %v4312_v45 = vmax.f32 %v3410_v8, 0.0  ;;  %v3431_v61 = vadd.f32 %v1442_v32, %v3003_v15 }
 0x1e5   : > { %v1600_v42 = vmax.f32 %v1587_v40, %v4456_v17  ;;  %v1635_v30 = vmax.f32 %v1622_v3, %v4457_v19  ;;  %v1623_v16 = vmax.f32 %v3189_v38, %v4458_v63  ;;  %v4459_v62 = vmax.f32 %v3296_v35, 0.0  ;;  %4460 = vst [vmem:[#allocation69_spill] sm:$0xff] %v3445_v5  ;;  %v1345_v3 = vpop.f32.mrb[44].mxu0 }
 0x1e6   : > { %4455 = vst [vmem:[#allocation68_spill] sm:$0xff] %v3431_v61  ;;  %v3449_v32 = vadd.f32 %v2960_v10, %v2827_v27  ;;  %v4314_v40 = vmax.f32 %v3407_v47, 0.0  ;;  %1678 = vrot.lane.b32.xlu1 %v3414_v28, %s2453_s18  ;;  %v4462_v19 = vmax.f32 %v3390_v50, 0.0  ;;  %v3460_v26 = vadd.f32 %v1345_v3, %v2965_v46  ;;  %v1347_v58 = vpop.f32.mrb[45].mxu0  ;;  %v1446_v27 = vpop.f32.mrb[44].mxu1 }
 0x1e7   : > { %v1601_v36 = vmax.f32 %v1588_v4, %v4459_v62  ;;  %v1636_v63 = vmax.f32 %v1623_v16, %v4312_v45  ;;  %v4315_v4 = vmax.f32 %v3421_v44, 0.0  ;;  %v3464_v10 = vadd.f32 %v2962_v48, %v2840_v34  ;;  %v1349_v16 = vpop.f32.mrb[46].mxu0 }
 0x1e8   : > { %4461 = vst [vmem:[#allocation70_spill] sm:$0xff] %v3449_v32  ;;  %v1648_v38 = vmax.f32 %v1635_v30, %v4462_v19  ;;  %4463 = vst [vmem:[#allocation71_spill] sm:$0xff] %v3460_v26  ;;  %v3468_v62 = vadd.f32 %v1347_v58, %v2968_v54  ;;  %v3471_v30 = vadd.f32 %v1446_v27, %v2980_v53  ;;  %v1448_v19 = vpop.f32.mrb[45].mxu1  ;;  %v4317_v34 = vmax.f32 %v3460_v26, 0.0  ;;  %v1351_v20 = vpop.f32.mrb[47].mxu0 }
 0x1e9   : > { %4464 = vst [vmem:[#allocation72_spill] sm:$0xff] %v3464_v10  ;;  %v1649_v45 = vmax.f32 %v1636_v63, %v4315_v4  ;;  %v3481_v48 = vadd.f32 %v1349_v16, %v2965_v46  ;;  %v1450_v58 = vpop.f32.mrb[46].mxu1  ;;  %v3486_v35 = vadd.f32 %v1448_v19, %v3003_v15  ;;  %v4467_v63 = vmax.f32 %v3431_v61, 0.0 }
 0x1ea   : > { %v3475_v3 = vmax.f32 %v1648_v38, %v4314_v40  ;;  %v3489_v38 = vadd.f32 %v1351_v20, %v2968_v54  ;;  %v1452_v40 = vpop.f32.mrb[47].mxu1  ;;  %v1624_v16 = vmax.f32 %v3207_v9, %v4317_v34  ;;  %v3500_v17 = vadd.f32 %v1450_v58, %v2980_v53 }
 0x1eb   : > { %4465 = vst [vmem:[#allocation73_spill] sm:$0xff] %v3481_v48  ;;  %v3493_v4 = vmax.f32 %v1649_v45, %v4467_v63  ;;  %v3508_v45 = vadd.f32 %v1452_v40, %v3003_v15  ;;  %v4470_v63 = vmax.f32 %v3289_v52, 0.0  ;;  %v4471_v34 = vmax.f32 %v3468_v62, 0.0  ;;  %v4474_v40 = vld [vmem:[#allocation27_spill] sm:$0xff] }
 0x1ec   : > { %4466 = vst [vmem:[#allocation74_spill] sm:$0xff] %v3489_v38  ;;  %4468 = vst [vmem:[#allocation75_spill] sm:$0xff] %v3500_v17  ;;  %1680 = vrot.lane.b32.xlu0 %v3475_v3, %s2453_s18  ;;  %v4472_v58 = vmax.f32 %v3481_v48, 0.0  ;;  %v4473_v20 = vmax.f32 %v3357_v22, 0.0  ;;  %v3523_v61 = vadd.f32 %v4474_v40, %v2871_v49  ;;  %v4326_v52 = vmax.f32 %v3500_v17, 0.0 }
 0x1ed   : > { %4469 = vst [vmem:[#allocation76_spill] sm:$0xff] %v3508_v45  ;;  %v1613_v9 = vmax.f32 %v1600_v42, %v4470_v63  ;;  %v1637_v33 = vmax.f32 %v1624_v16, %v4471_v34  ;;  %1682 = vrot.lane.b32.xlu1 %v3493_v4, %s2453_s18  ;;  %v1355_v63 = vpop.f32.mrb[48].mxu0  ;;  %v4476_v34 = vmax.f32 %v3471_v30, 0.0  ;;  %v4478_v27 = vmax.f32 %v3449_v32, 0.0 }
 0x1ee   : > { %v1625_v26 = vmax.f32 %v1612_v51, %v4472_v58  ;;  %v1614_v19 = vmax.f32 %v1601_v36, %v4473_v20  ;;  %4475 = vst [vmem:[#allocation27_spill] sm:$0xff] %v3523_v61  ;;  %v4477_v51 = vmax.f32 %v3489_v38, 0.0  ;;  %v3532_v22 = vadd.f32 %v1355_v63, %v2965_v46  ;;  %v1357_v36 = vpop.f32.mrb[49].mxu0  ;;  %v1456_v20 = vpop.f32.mrb[48].mxu1 }
 0x1ef   : > { %v1650_v16 = vmax.f32 %v1637_v33, %v4476_v34  ;;  %v4479_v49 = vmax.f32 %v3445_v5, 0.0  ;;  %v3540_v48 = vadd.f32 %v1357_v36, %v2968_v54  ;;  %v3543_v33 = vadd.f32 %v1456_v20, %v2980_v53  ;;  %v1458_v34 = vpop.f32.mrb[49].mxu1 }
 0x1f0   : > { %v1638_v58 = vmax.f32 %v1625_v26, %v4477_v51  ;;  %v1359_v26 = vpop.f32.mrb[50].mxu0  ;;  %v4481_v63 = vmax.f32 %v3486_v35, 0.0  ;;  %v4329_v5 = vmax.f32 %v3532_v22, 0.0  ;;  %v1460_v36 = vpop.f32.mrb[50].mxu1  ;;  %v3558_v38 = vadd.f32 %v1458_v34, %v3003_v15 }
 0x1f1   : > { %v1589_v40 = vmax.f32 %v4479_v49, %v4478_v27  ;;  %4480 = vst [vmem:[#allocation77_spill] sm:$0xff] %v3540_v48  ;;  %v3553_v27 = vadd.f32 %v1359_v26, %v2965_v46  ;;  %v1361_v49 = vpop.f32.mrb[51].mxu0  ;;  %v3571_v42 = vadd.f32 %v1460_v36, %v2980_v53  ;;  %v4485_v34 = vmax.f32 %v3464_v10, 0.0 }
 0x1f2   : > { %v3547_v51 = vmax.f32 %v1650_v16, %v4481_v63  ;;  %v1651_v32 = vmax.f32 %v1638_v58, %v4326_v52  ;;  %v3561_v16 = vadd.f32 %v1361_v49, %v2968_v54  ;;  %v1462_v63 = vpop.f32.mrb[51].mxu1  ;;  %v4484_v58 = vmax.f32 %v3508_v45, 0.0 }
 0x1f3   : > { %4482 = vst [vmem:[#allocation78_spill] sm:$0xff] %v3553_v27  ;;  %v1626_v26 = vmax.f32 %v1613_v9, %v4329_v5  ;;  %v4331_v17 = vmax.f32 %v3553_v27, 0.0  ;;  %v1602_v49 = vmax.f32 %v1589_v40, %v4485_v34  ;;  %v3584_v5 = vadd.f32 %v1462_v63, %v3003_v15 }
 0x1f4   : > { %4483 = vst [vmem:[#allocation79_spill] sm:$0xff] %v3561_v16  ;;  %v3565_v52 = vmax.f32 %v1651_v32, %v4484_v58  ;;  %1684 = vrot.lane.b32.xlu0 %v3547_v51, %s2453_s18  ;;  %v4334_v45 = vmax.f32 %v3561_v16, 0.0  ;;  %v4486_v32 = vmax.f32 %v3540_v48, 0.0  ;;  %v4487_v40 = vmax.f32 %v3543_v33, 0.0 }
 0x1f5   : > { %v1627_v9 = vmax.f32 %v1614_v19, %v4331_v17  ;;  %v1365_v10 = vpop.f32.mrb[52].mxu0  ;;  %v1466_v63 = vpop.f32.mrb[52].mxu1  ;;  %v4488_v17 = vmax.f32 %v3523_v61, 0.0 }
 0x1f6   : > { %v1639_v58 = vmax.f32 %v1626_v26, %v4486_v32  ;;  %1686 = vrot.lane.b32.xlu1 %v3565_v52, %s2453_s18  ;;  %v1567_v26 = vmax.f32 %v3571_v42, 0.0  ;;  %v3595_v32 = vadd.f32 %v1365_v10, %v2965_v46  ;;  %v1367_v19 = vpop.f32.mrb[53].mxu0  ;;  %v3603_v36 = vadd.f32 %v1466_v63, %v2980_v53 }
 0x1f7   : > { %v1640_v20 = vmax.f32 %v1627_v9, %v4334_v45  ;;  %v1615_v27 = vmax.f32 %v1602_v49, %v4488_v17  ;;  %v3600_v48 = vadd.f32 %v1367_v19, %v2968_v54  ;;  %v4489_v9 = vmax.f32 %v3558_v38, 0.0 }
 0x1f8   : > { %v1652_v34 = vmax.f32 %v1639_v58, %v4487_v40  ;;  %v1369_v58 = vpop.f32.mrb[54].mxu0  ;;  %v1468_v40 = vpop.f32.mrb[53].mxu1  ;;  %v1568_v10 = vmax.f32 %v3584_v5, 0.0  ;;  %v1573_v16 = vmax.f32 %v3595_v32, 0.0 }
 0x1f9   : > { %v1653_v46 = vmax.f32 %v1640_v20, %v1567_v26  ;;  %v1370_v61 = vpop.f32.mrb[55].mxu0  ;;  %v1470_v17 = vpop.f32.mrb[54].mxu1  ;;  %v1574_v54 = vmax.f32 %v3600_v48, 0.0  ;;  %v3618_v63 = vadd.f32 %v1468_v40, %v3003_v15 }
 0x1fa   : > { %v1665_v45 = vmax.f32 %v1652_v34, %v4489_v9  ;;  %v1471_v49 = vpop.f32.mrb[55].mxu1  ;;  %v1628_v19 = vmax.f32 %v1615_v27, %v1573_v16  ;;  %v1575_v34 = vmax.f32 %v3603_v36, 0.0 }
 0x1fb   : > { %v1666_v53 = vmax.f32 %v1653_v46, %v1568_v10  ;;  %v4337_v58 = vmax.f32 %v3618_v63, 0.0 }
 0x1fc   : > { %1688 = vrot.lane.b32.xlu0 %v1665_v45, %s2453_s18  ;;  %v1641_v61 = vmax.f32 %v1628_v19, %v1574_v54 }
 0x1fd   : > { %1690 = vrot.lane.b32.xlu1 %v1666_v53, %s2453_s18 }
 0x1fe   : > { %v1654_v20 = vmax.f32 %v1641_v61, %v1575_v34 }
 0x200   : > { %v1667_v27 = vmax.f32 %v1654_v20, %v4337_v58 }
 0x202   : > { %1692 = vrot.lane.b32.xlu0 %v1667_v27, %s2453_s18 }
 0x247   : > { %v1669_v9 = vpop.permute.xlu0 %1668 }
 0x248   : > { %v1694_v15 = vmax.f32 %v3271_v14, %v1669_v9 }
 0x24a   : > { %1707 = vrot.lane.b32.xlu1 %v1694_v15, %s2454_s20 }
 0x24b   : > { %v1671_v40 = vpop.permute.xlu0 %1670 }
 0x24c   : > { %v1695_v46 = vmax.f32 %v3300_v57, %v1671_v40 }
 0x24d   : > { %v1673_v17 = vpop.permute.xlu1 %1672 }
 0x24e   : > { %1709 = vrot.lane.b32.xlu0 %v1695_v46, %s2454_s20  ;;  %v1696_v49 = vmax.f32 %v3349_v21, %v1673_v17 }
 0x250   : > { %1711 = vrot.lane.b32.xlu1 %v1696_v49, %s2454_s20 }
 0x252   : > { %v1675_v19 = vpop.permute.xlu1 %1674 }
 0x253   : > { %v1697_v61 = vmax.f32 %v3383_v12, %v1675_v19 }
 0x255   : > { %v1677_v20 = vpop.permute.xlu0 %1676  ;;  %1713 = vrot.lane.b32.xlu0 %v1697_v61, %s2454_s20 }
 0x256   : > { %v1698_v58 = vmax.f32 %v3394_v13, %v1677_v20 }
 0x258   : > { %v1679_v14 = vpop.permute.xlu1 %1678  ;;  %1715 = vrot.lane.b32.xlu1 %v1698_v58, %s2454_s20 }
 0x259   : > { %v1699_v57 = vmax.f32 %v3414_v28, %v1679_v14 }
 0x25b   : > { %1717 = vrot.lane.b32.xlu0 %v1699_v57, %s2454_s20 }
 0x25e   : > { %v1681_v9 = vpop.permute.xlu0 %1680 }
 0x25f   : > { %v1700_v21 = vmax.f32 %v3475_v3, %v1681_v9  ;;  %v1683_v15 = vpop.permute.xlu1 %1682  ;;  %v4495_v9 = vld [vmem:[#allocation13_spill] sm:$0xff] }
 0x260   : > { %v1701_v40 = vmax.f32 %v3493_v4, %v1683_v15  ;;  %v4497_v15 = vld [vmem:[#allocation18_spill] sm:$0xff] }
 0x261   : > { %1719 = vrot.lane.b32.xlu1 %v1700_v21, %s2454_s20  ;;  %v4496_v21 = vmax.f32 %v4495_v9, 0.0 }
 0x262   : > { %1721 = vrot.lane.b32.xlu0 %v1701_v40, %s2454_s20  ;;  %v4498_v40 = vmax.f32 %v4497_v15, 0.0  ;;  %v4512_v15 = vmax.f32 %v3169_v41, 0.0 }
 0x266   : > { %v1685_v12 = vpop.permute.xlu0 %1684 }
 0x267   : > { %v1702_v13 = vmax.f32 %v3547_v51, %v1685_v12  ;;  %v4490_v51 = vlaneseq }
 0x268   : > { %v1687_v46 = vpop.permute.xlu1 %1686 }
 0x269   : > { %v1703_v58 = vmax.f32 %v3565_v52, %v1687_v46  ;;  %1723 = vrot.lane.b32.xlu1 %v1702_v13, %s2454_s20  ;;  %v1734_v61 = vand.u32 127, %v4490_v51  ;;  %v4499_v13 = vmax.f32 %v2904_v6, 0.0  ;;  %v4500_v6 = vmax.f32 %v3141_v60, 0.0 }
 0x26b   : > { %1725 = vrot.lane.b32.xlu0 %v1703_v58, %s2454_s20  ;;  %v1739_v20 = vand.u32 63, %v1734_v61  ;;  %v4506_v61 = vld [vmem:[#allocation15_spill] sm:$0xff] }
 0x26d   : > { %vm3655_vm0 = vcmp.ge.s32.totalorder %v1739_v20, 32  ;;  %v4507_v20 = vmax.f32 %v4506_v61, 0.0 }
 0x26e   : > { %v1689_v28 = vpop.permute.xlu0 %1688 }
 0x26f   : > { %v1704_v3 = vmax.f32 %v1665_v45, %v1689_v28  ;;  %v1691_v17 = vpop.permute.xlu1 %1690  ;;  %v4493_v45 = vld [vmem:[#allocation12_spill] sm:$0xff]  ;;  %v4501_v28 = vmax.f32 %v3147_v1, 0.0 }
 0x270   : > { %v1705_v49 = vmax.f32 %v1666_v53, %v1691_v17  ;;  %v4494_v57 = vmax.f32 %v4493_v45, 0.0  ;;  %v4502_v17 = vmax.f32 %v3150_v2, 0.0 }
 0x271   : > { %1727 = vrot.lane.b32.xlu1 %v1704_v3, %s2454_s20 }
 0x272   : > { %1729 = vrot.lane.b32.xlu0 %v1705_v49, %s2454_s20 }
 0x274   : > { %v1693_v4 = vpop.permute.xlu0 %1692 }
 0x275   : > { %v1706_v19 = vmax.f32 %v1667_v27, %v1693_v4  ;;  %v4503_v4 = vmax.f32 %v3215_v7, 0.0 }
 0x277   : > { %1731 = vrot.lane.b32.xlu1 %v1706_v19, %s2454_s20  ;;  %v4504_v19 = vld [vmem:[#allocation14_spill] sm:$0xff] }
 0x278   : > { %v4505_v51 = vmax.f32 %v4504_v19, 0.0 }
 0x2bc   : > { %v1708_v14 = vpop.permute.xlu1 %1707 }
 0x2bd   : > { %v1748_v53 = vsel %vm3655_vm0, %v1708_v14, %v4494_v57  ;;  %v1774_v27 = vsel %vm3655_vm0, %v1708_v14, %v4496_v21  ;;  %v1800_v12 = vsel %vm3655_vm0, %v1708_v14, %v4498_v40  ;;  %v1826_v46 = vsel %vm3655_vm0, %v1708_v14, %v4499_v13 }
 0x2be   : > { %1761 = vst [vmem:[%s3675_s21] sm:$0xff] %v1748_v53  ;;  %1787 = vst [vmem:[%s3675_s21 + $0x8] sm:$0xff] %v1774_v27  ;;  %v1852_v58 = vsel %vm3655_vm0, %v1708_v14, %v4500_v6  ;;  %v1878_v3 = vsel %vm3655_vm0, %v1708_v14, %v4501_v28  ;;  %v1904_v49 = vsel %vm3655_vm0, %v1708_v14, %v4502_v17  ;;  %v4510_v53 = vmax.f32 %v2942_v56, 0.0 }
 0x2bf   : > { %1813 = vst [vmem:[%s3675_s21 + $0x10] sm:$0xff] %v1800_v12  ;;  %1839 = vst [vmem:[%s3675_s21 + $0x18] sm:$0xff] %v1826_v46  ;;  %v1930_v60 = vsel %vm3655_vm0, %v1708_v14, %v4503_v4  ;;  %v4508_v14 = vld [vmem:[#allocation21_spill] sm:$0xff]  ;;  %v4511_v21 = vmax.f32 %v3159_v18, 0.0  ;;  %v4513_v40 = vmax.f32 %v3203_v31, 0.0  ;;  %v4514_v13 = vmax.f32 %v3233_v55, 0.0 }
 0x2c0   : > { %1865 = vst [vmem:[%s3675_s21 + $0x20] sm:$0xff] %v1852_v58  ;;  %1891 = vst [vmem:[%s3675_s21 + $0x28] sm:$0xff] %v1878_v3  ;;  %v1710_v1 = vpop.permute.xlu0 %1709  ;;  %v4509_v45 = vmax.f32 %v4508_v14, 0.0  ;;  %v4515_v46 = vld [vmem:[#allocation16_spill] sm:$0xff]  ;;  %v4517_v58 = vld [vmem:[#allocation17_spill] sm:$0xff]  ;;  %v4521_v4 = vmax.f32 %v2936_v39, 0.0 }
 0x2c1   : > { %1917 = vst [vmem:[%s3675_s21 + $0x30] sm:$0xff] %v1904_v49  ;;  %1943 = vst [vmem:[%s3675_s21 + $0x38] sm:$0xff] %v1930_v60  ;;  %v1749_v2 = vsel %vm3655_vm0, %v1710_v1, %v4505_v51  ;;  %v1775_v7 = vsel %vm3655_vm0, %v1710_v1, %v4507_v20  ;;  %v1827_v9 = vsel %vm3655_vm0, %v1710_v1, %v4510_v53  ;;  %v4516_v6 = vmax.f32 %v4515_v46, 0.0  ;;  %v4519_v3 = vld [vmem:[#allocation22_spill] sm:$0xff]  ;;  %v4530_v53 = vld [vmem:[#allocation23_spill] sm:$0xff] }
 0x2c2   : > { %v1801_v57 = vsel %vm3655_vm0, %v1710_v1, %v4509_v45  ;;  %1762 = vst [vmem:[%s3675_s21 + $0x40] sm:$0xff] %v1749_v2  ;;  %1788 = vst [vmem:[%s3675_s21 + $0x48] sm:$0xff] %v1775_v7  ;;  %v1853_v27 = vsel %vm3655_vm0, %v1710_v1, %v4511_v21  ;;  %v1879_v56 = vsel %vm3655_vm0, %v1710_v1, %v4512_v15  ;;  %v1712_v41 = vpop.permute.xlu1 %1711  ;;  %v4518_v28 = vmax.f32 %v4517_v58, 0.0  ;;  %v4526_v7 = vld [vmem:[#allocation19_spill] sm:$0xff]  ;;  %v4528_v45 = vld [vmem:[#allocation20_spill] sm:$0xff] }
 0x2c3   : > { %1814 = vst [vmem:[%s3675_s21 + $0x50] sm:$0xff] %v1801_v57  ;;  %1840 = vst [vmem:[%s3675_s21 + $0x58] sm:$0xff] %v1827_v9  ;;  %v1905_v12 = vsel %vm3655_vm0, %v1710_v1, %v4513_v40  ;;  %v1931_v18 = vsel %vm3655_vm0, %v1710_v1, %v4514_v13  ;;  %v1750_v31 = vsel %vm3655_vm0, %v1712_v41, %v4516_v6  ;;  %v4520_v17 = vmax.f32 %v4519_v3, 0.0 }
 0x2c4   : > { %1866 = vst [vmem:[%s3675_s21 + $0x60] sm:$0xff] %v1853_v27  ;;  %1892 = vst [vmem:[%s3675_s21 + $0x68] sm:$0xff] %v1879_v56  ;;  %v1776_v55 = vsel %vm3655_vm0, %v1712_v41, %v4518_v28  ;;  %v1828_v60 = vsel %vm3655_vm0, %v1712_v41, %v4521_v4  ;;  %v4522_v1 = vmax.f32 %v3228_v29, 0.0  ;;  %v4523_v51 = vmax.f32 %v3236_v25, 0.0  ;;  %v4532_v27 = vld [vmem:[#allocation25_spill] sm:$0xff] }
 0x2c5   : > { %1918 = vst [vmem:[%s3675_s21 + $0x70] sm:$0xff] %v1905_v12  ;;  %1944 = vst [vmem:[%s3675_s21 + $0x78] sm:$0xff] %v1931_v18  ;;  %v1802_v49 = vsel %vm3655_vm0, %v1712_v41, %v4520_v17  ;;  %v4524_v2 = vmax.f32 %v3239_v37, 0.0  ;;  %v4525_v20 = vmax.f32 %v3279_v23, 0.0  ;;  %v4527_v14 = vmax.f32 %v4526_v7, 0.0  ;;  %v4534_v12 = vld [vmem:[#allocation54_spill] sm:$0xff] }
 0x2c6   : > { %1763 = vst [vmem:[%s3675_s21 + $0x80] sm:$0xff] %v1750_v31  ;;  %1789 = vst [vmem:[%s3675_s21 + $0x88] sm:$0xff] %v1776_v55  ;;  %v1854_v19 = vsel %vm3655_vm0, %v1712_v41, %v4522_v1  ;;  %v1880_v39 = vsel %vm3655_vm0, %v1712_v41, %v4523_v51  ;;  %v4529_v57 = vmax.f32 %v4528_v45, 0.0  ;;  %v4531_v9 = vmax.f32 %v4530_v53, 0.0  ;;  %v4538_v31 = vld [vmem:[#allocation58_spill] sm:$0xff] }
 0x2c7   : > { %1815 = vst [vmem:[%s3675_s21 + $0x90] sm:$0xff] %v1802_v49  ;;  %1841 = vst [vmem:[%s3675_s21 + $0x98] sm:$0xff] %v1828_v60  ;;  %v1906_v61 = vsel %vm3655_vm0, %v1712_v41, %v4524_v2  ;;  %v1932_v29 = vsel %vm3655_vm0, %v1712_v41, %v4525_v20  ;;  %v1714_v25 = vpop.permute.xlu0 %1713  ;;  %v4533_v15 = vmax.f32 %v4532_v27, 0.0  ;;  %v4535_v13 = vmax.f32 %v4534_v12, 0.0  ;;  %v4536_v41 = vld [vmem:[#allocation56_spill] sm:$0xff]  ;;  %v4541_v17 = vld [vmem:[#allocation26_spill] sm:$0xff] }
 0x2c8   : > { %1867 = vst [vmem:[%s3675_s21 + $0xa0] sm:$0xff] %v1854_v19  ;;  %1893 = vst [vmem:[%s3675_s21 + $0xa8] sm:$0xff] %v1880_v39  ;;  %v1751_v37 = vsel %vm3655_vm0, %v1714_v25, %v4527_v14  ;;  %v1777_v23 = vsel %vm3655_vm0, %v1714_v25, %v4529_v57  ;;  %v1803_v21 = vsel %vm3655_vm0, %v1714_v25, %v4531_v9  ;;  %v4537_v46 = vmax.f32 %v4536_v41, 0.0  ;;  %v4543_v60 = vld [vmem:[#allocation28_spill] sm:$0xff]  ;;  %v4545_v19 = vld [vmem:[#allocation31_spill] sm:$0xff] }
 0x2c9   : > { %1919 = vst [vmem:[%s3675_s21 + $0xb0] sm:$0xff] %v1906_v61  ;;  %1945 = vst [vmem:[%s3675_s21 + $0xb8] sm:$0xff] %v1932_v29  ;;  %v1829_v56 = vsel %vm3655_vm0, %v1714_v25, %v4533_v15  ;;  %v1855_v18 = vsel %vm3655_vm0, %v1714_v25, %v4535_v13  ;;  %v4539_v58 = vmax.f32 %v4538_v31, 0.0  ;;  %v4540_v55 = vmax.f32 %v3322_v11, 0.0  ;;  %v4547_v2 = vld [vmem:[#allocation37_spill] sm:$0xff]  ;;  %v4557_v15 = vld [vmem:[#allocation30_spill] sm:$0xff] }
 0x2ca   : > { %v1716_v40 = vpop.permute.xlu1 %1715  ;;  %1764 = vst [vmem:[%s3675_s21 + $0xc0] sm:$0xff] %v1751_v37  ;;  %1790 = vst [vmem:[%s3675_s21 + $0xc8] sm:$0xff] %v1777_v23  ;;  %v1881_v6 = vsel %vm3655_vm0, %v1714_v25, %v4537_v46  ;;  %v4542_v49 = vmax.f32 %v4541_v17, 0.0  ;;  %v4544_v1 = vmax.f32 %v4543_v60, 0.0  ;;  %v4546_v51 = vmax.f32 %v4545_v19, 0.0  ;;  %v4549_v29 = vld [vmem:[#allocation61_spill] sm:$0xff] }
 0x2cb   : > { %1816 = vst [vmem:[%s3675_s21 + $0xd0] sm:$0xff] %v1803_v21  ;;  %1842 = vst [vmem:[%s3675_s21 + $0xd8] sm:$0xff] %v1829_v56  ;;  %v1907_v28 = vsel %vm3655_vm0, %v1714_v25, %v4539_v58  ;;  %v1933_v3 = vsel %vm3655_vm0, %v1714_v25, %v4540_v55  ;;  %v4548_v61 = vmax.f32 %v4547_v2, 0.0  ;;  %v4550_v25 = vmax.f32 %v4549_v29, 0.0  ;;  %v4553_v23 = vld [vmem:[#allocation63_spill] sm:$0xff]  ;;  %v4561_v41 = vld [vmem:[#allocation41_spill] sm:$0xff] }
 0x2cc   : > { %1868 = vst [vmem:[%s3675_s21 + $0xe0] sm:$0xff] %v1855_v18  ;;  %1894 = vst [vmem:[%s3675_s21 + $0xe8] sm:$0xff] %v1881_v6  ;;  %v1752_v4 = vsel %vm3655_vm0, %v1716_v40, %v4542_v49  ;;  %v1778_v11 = vsel %vm3655_vm0, %v1716_v40, %v4544_v1  ;;  %v1804_v39 = vsel %vm3655_vm0, %v1716_v40, %v4546_v51  ;;  %v4551_v14 = vmax.f32 %v3310_v43, 0.0  ;;  %v4555_v43 = vld [vmem:[#allocation29_spill] sm:$0xff]  ;;  %v4563_v31 = vld [vmem:[#allocation62_spill] sm:$0xff] }
 0x2cd   : > { %1920 = vst [vmem:[%s3675_s21 + $0xf0] sm:$0xff] %v1907_v28  ;;  %1946 = vst [vmem:[%s3675_s21 + $0xf8] sm:$0xff] %v1933_v3  ;;  %v1830_v20 = vsel %vm3655_vm0, %v1716_v40, %v4548_v61  ;;  %v1856_v7 = vsel %vm3655_vm0, %v1716_v40, %v4550_v25  ;;  %v4552_v45 = vmax.f32 %v3313_v24, 0.0  ;;  %v4554_v53 = vmax.f32 %v4553_v23, 0.0  ;;  %v1718_v21 = vpop.permute.xlu0 %1717  ;;  %v4565_v55 = vld [vmem:[#allocation64_spill] sm:$0xff]  ;;  %v4567_v49 = vld [vmem:[#allocation65_spill] sm:$0xff] }
 0x2ce   : > { %1765 = vst [vmem:[%s3675_s21 + $0x100] sm:$0xff] %v1752_v4  ;;  %1791 = vst [vmem:[%s3675_s21 + $0x108] sm:$0xff] %v1778_v11  ;;  %v1882_v37 = vsel %vm3655_vm0, %v1716_v40, %v4551_v14  ;;  %v4556_v27 = vmax.f32 %v4555_v43, 0.0  ;;  %v4558_v56 = vmax.f32 %v4557_v15, 0.0  ;;  %v4562_v46 = vmax.f32 %v4561_v41, 0.0  ;;  %v4569_v1 = vld [vmem:[#allocation66_spill] sm:$0xff] }
 0x2cf   : > { %1817 = vst [vmem:[%s3675_s21 + $0x110] sm:$0xff] %v1804_v39  ;;  %1843 = vst [vmem:[%s3675_s21 + $0x118] sm:$0xff] %v1830_v20  ;;  %v1908_v57 = vsel %vm3655_vm0, %v1716_v40, %v4552_v45  ;;  %v1934_v9 = vsel %vm3655_vm0, %v1716_v40, %v4554_v53  ;;  %v4559_v40 = vld [vmem:[#allocation36_spill] sm:$0xff]  ;;  %v4564_v58 = vmax.f32 %v4563_v31, 0.0  ;;  %v4566_v3 = vmax.f32 %v4565_v55, 0.0  ;;  %v4573_v20 = vld [vmem:[#allocation33_spill] sm:$0xff] }
 0x2d0   : > { %1869 = vst [vmem:[%s3675_s21 + $0x120] sm:$0xff] %v1856_v7  ;;  %1895 = vst [vmem:[%s3675_s21 + $0x128] sm:$0xff] %v1882_v37  ;;  %v1753_v24 = vsel %vm3655_vm0, %v1718_v21, %v4556_v27  ;;  %v1779_v12 = vsel %vm3655_vm0, %v1718_v21, %v4558_v56  ;;  %v4560_v13 = vmax.f32 %v4559_v40, 0.0  ;;  %v1831_v6 = vsel %vm3655_vm0, %v1718_v21, %v4562_v46  ;;  %v4571_v39 = vld [vmem:[#allocation32_spill] sm:$0xff]  ;;  %v4577_v45 = vld [vmem:[#allocation46_spill] sm:$0xff] }
 0x2d1   : > { %1921 = vst [vmem:[%s3675_s21 + $0x130] sm:$0xff] %v1908_v57  ;;  %1947 = vst [vmem:[%s3675_s21 + $0x138] sm:$0xff] %v1934_v9  ;;  %v1857_v28 = vsel %vm3655_vm0, %v1718_v21, %v4564_v58  ;;  %v1883_v17 = vsel %vm3655_vm0, %v1718_v21, %v4566_v3  ;;  %v4568_v4 = vmax.f32 %v4567_v49, 0.0  ;;  %v4570_v11 = vmax.f32 %v4569_v1, 0.0  ;;  %v4575_v7 = vld [vmem:[#allocation40_spill] sm:$0xff]  ;;  %v4579_v53 = vld [vmem:[#allocation67_spill] sm:$0xff] }
 0x2d2   : > { %v1805_v18 = vsel %vm3655_vm0, %v1718_v21, %v4560_v13  ;;  %1766 = vst [vmem:[%s3675_s21 + $0x140] sm:$0xff] %v1753_v24  ;;  %1792 = vst [vmem:[%s3675_s21 + $0x148] sm:$0xff] %v1779_v12  ;;  %v4572_v2 = vmax.f32 %v4571_v39, 0.0  ;;  %v4574_v29 = vmax.f32 %v4573_v20, 0.0  ;;  %v4576_v14 = vmax.f32 %v4575_v7, 0.0  ;;  %v4588_v46 = vld [vmem:[#allocation42_spill] sm:$0xff] }
 0x2d3   : > { %1818 = vst [vmem:[%s3675_s21 + $0x150] sm:$0xff] %v1805_v18  ;;  %1844 = vst [vmem:[%s3675_s21 + $0x158] sm:$0xff] %v1831_v6  ;;  %v1909_v60 = vsel %vm3655_vm0, %v1718_v21, %v4568_v4  ;;  %v1935_v19 = vsel %vm3655_vm0, %v1718_v21, %v4570_v11  ;;  %v1720_v51 = vpop.permute.xlu1 %1719  ;;  %v4578_v57 = vmax.f32 %v4577_v45, 0.0  ;;  %v4580_v9 = vmax.f32 %v4579_v53, 0.0  ;;  %v4586_v18 = vld [vmem:[#allocation35_spill] sm:$0xff]  ;;  %v4595_v11 = vld [vmem:[#allocation68_spill] sm:$0xff] }
 0x2d4   : > { %1870 = vst [vmem:[%s3675_s21 + $0x160] sm:$0xff] %v1857_v28  ;;  %1896 = vst [vmem:[%s3675_s21 + $0x168] sm:$0xff] %v1883_v17  ;;  %v1754_v61 = vsel %vm3655_vm0, %v1720_v51, %v4572_v2  ;;  %v1780_v25 = vsel %vm3655_vm0, %v1720_v51, %v4574_v29  ;;  %v1806_v37 = vsel %vm3655_vm0, %v1720_v51, %v4576_v14  ;;  %v4581_v43 = vmax.f32 %v3387_v0, 0.0  ;;  %v1722_v40 = vpop.permute.xlu0 %1721  ;;  %v4584_v0 = vld [vmem:[#allocation34_spill] sm:$0xff]  ;;  %v4590_v58 = vld [vmem:[#allocation47_spill] sm:$0xff] }
 0x2d5   : > { %1922 = vst [vmem:[%s3675_s21 + $0x170] sm:$0xff] %v1909_v60  ;;  %1948 = vst [vmem:[%s3675_s21 + $0x178] sm:$0xff] %v1935_v19  ;;  %v1832_v23 = vsel %vm3655_vm0, %v1720_v51, %v4578_v57  ;;  %v1858_v21 = vsel %vm3655_vm0, %v1720_v51, %v4580_v9  ;;  %v4582_v24 = vmax.f32 %v3390_v50, 0.0  ;;  %v4583_v56 = vmax.f32 %v3407_v47, 0.0  ;;  %v4599_v2 = vld [vmem:[#allocation39_spill] sm:$0xff]  ;;  %v4603_v14 = vld [vmem:[#allocation48_spill] sm:$0xff] }
 0x2d6   : > { %1767 = vst [vmem:[%s3675_s21 + $0x180] sm:$0xff] %v1754_v61  ;;  %1793 = vst [vmem:[%s3675_s21 + $0x188] sm:$0xff] %v1780_v25  ;;  %v1884_v27 = vsel %vm3655_vm0, %v1720_v51, %v4581_v43  ;;  %v4585_v13 = vmax.f32 %v4584_v0, 0.0  ;;  %v4587_v41 = vmax.f32 %v4586_v18, 0.0  ;;  %v4589_v6 = vmax.f32 %v4588_v46, 0.0  ;;  %v4601_v29 = vld [vmem:[#allocation43_spill] sm:$0xff] }
 0x2d7   : > { %1819 = vst [vmem:[%s3675_s21 + $0x190] sm:$0xff] %v1806_v37  ;;  %1845 = vst [vmem:[%s3675_s21 + $0x198] sm:$0xff] %v1832_v23  ;;  %v1910_v15 = vsel %vm3655_vm0, %v1720_v51, %v4582_v24  ;;  %v1936_v12 = vsel %vm3655_vm0, %v1720_v51, %v4583_v56  ;;  %v4591_v28 = vmax.f32 %v4590_v58, 0.0  ;;  %v4592_v3 = vmax.f32 %v3400_v59, 0.0  ;;  %v4597_v51 = vld [vmem:[#allocation38_spill] sm:$0xff]  ;;  %v4605_v57 = vld [vmem:[#allocation71_spill] sm:$0xff] }
 0x2d8   : > { %1871 = vst [vmem:[%s3675_s21 + $0x1a0] sm:$0xff] %v1858_v21  ;;  %1897 = vst [vmem:[%s3675_s21 + $0x1a8] sm:$0xff] %v1884_v27  ;;  %v1755_v50 = vsel %vm3655_vm0, %v1722_v40, %v4585_v13  ;;  %v1781_v47 = vsel %vm3655_vm0, %v1722_v40, %v4587_v41  ;;  %v1807_v31 = vsel %vm3655_vm0, %v1722_v40, %v4589_v6  ;;  %v4593_v49 = vmax.f32 %v3410_v8, 0.0  ;;  %v4614_v13 = vld [vmem:[#allocation49_spill] sm:$0xff]  ;;  %v4616_v41 = vld [vmem:[#allocation50_spill] sm:$0xff] }
 0x2d9   : > { %1923 = vst [vmem:[%s3675_s21 + $0x1b0] sm:$0xff] %v1910_v15  ;;  %1949 = vst [vmem:[%s3675_s21 + $0x1b8] sm:$0xff] %v1936_v12  ;;  %v1833_v55 = vsel %vm3655_vm0, %v1722_v40, %v4591_v28  ;;  %v1859_v17 = vsel %vm3655_vm0, %v1722_v40, %v4592_v3  ;;  %v4594_v60 = vmax.f32 %v3421_v44, 0.0  ;;  %v4596_v19 = vmax.f32 %v4595_v11, 0.0  ;;  %v4618_v6 = vld [vmem:[#allocation73_spill] sm:$0xff]  ;;  %v4620_v28 = vld [vmem:[#allocation74_spill] sm:$0xff] }
 0x2da   : > { %1768 = vst [vmem:[%s3675_s21 + $0x1c0] sm:$0xff] %v1755_v50  ;;  %1794 = vst [vmem:[%s3675_s21 + $0x1c8] sm:$0xff] %v1781_v47  ;;  %v1885_v4 = vsel %vm3655_vm0, %v1722_v40, %v4593_v49  ;;  %v4598_v39 = vmax.f32 %v4597_v51, 0.0  ;;  %v4600_v61 = vmax.f32 %v4599_v2, 0.0  ;;  %v4602_v25 = vmax.f32 %v4601_v29, 0.0 }
 0x2db   : > { %1820 = vst [vmem:[%s3675_s21 + $0x1d0] sm:$0xff] %v1807_v31  ;;  %1846 = vst [vmem:[%s3675_s21 + $0x1d8] sm:$0xff] %v1833_v55  ;;  %v1911_v1 = vsel %vm3655_vm0, %v1722_v40, %v4594_v60  ;;  %v1937_v59 = vsel %vm3655_vm0, %v1722_v40, %v4596_v19  ;;  %v1724_v8 = vpop.permute.xlu1 %1723  ;;  %v4604_v37 = vmax.f32 %v4603_v14, 0.0  ;;  %v4606_v23 = vmax.f32 %v4605_v57, 0.0  ;;  %v4612_v40 = vld [vmem:[#allocation45_spill] sm:$0xff]  ;;  %v4624_v60 = vld [vmem:[#allocation76_spill] sm:$0xff] }
 0x2dc   : > { %1872 = vst [vmem:[%s3675_s21 + $0x1e0] sm:$0xff] %v1859_v17  ;;  %1898 = vst [vmem:[%s3675_s21 + $0x1e8] sm:$0xff] %v1885_v4  ;;  %v1756_v44 = vsel %vm3655_vm0, %v1724_v8, %v4598_v39  ;;  %v1782_v20 = vsel %vm3655_vm0, %v1724_v8, %v4600_v61  ;;  %v1808_v7 = vsel %vm3655_vm0, %v1724_v8, %v4602_v25  ;;  %v4607_v9 = vmax.f32 %v3468_v62, 0.0  ;;  %v4610_v62 = vld [vmem:[#allocation44_spill] sm:$0xff]  ;;  %v4622_v17 = vld [vmem:[#allocation75_spill] sm:$0xff] }
 0x2dd   : > { %1924 = vst [vmem:[%s3675_s21 + $0x1f0] sm:$0xff] %v1911_v1  ;;  %1950 = vst [vmem:[%s3675_s21 + $0x1f8] sm:$0xff] %v1937_v59  ;;  %v1834_v45 = vsel %vm3655_vm0, %v1724_v8, %v4604_v37  ;;  %v1860_v53 = vsel %vm3655_vm0, %v1724_v8, %v4606_v23  ;;  %v4608_v43 = vmax.f32 %v3471_v30, 0.0  ;;  %v4609_v24 = vmax.f32 %v3486_v35, 0.0  ;;  %v1726_v56 = vpop.permute.xlu0 %1725  ;;  %v4626_v59 = vld [vmem:[#allocation51_spill] sm:$0xff]  ;;  %v4628_v39 = vld [vmem:[#allocation52_spill] sm:$0xff] }
 0x2de   : > { %1769 = vst [vmem:[%s3675_s21 + $0x200] sm:$0xff] %v1756_v44  ;;  %1795 = vst [vmem:[%s3675_s21 + $0x208] sm:$0xff] %v1782_v20  ;;  %v1886_v21 = vsel %vm3655_vm0, %v1724_v8, %v4607_v9  ;;  %v4611_v12 = vmax.f32 %v4610_v62, 0.0  ;;  %v4613_v0 = vmax.f32 %v4612_v40, 0.0  ;;  %v4615_v50 = vmax.f32 %v4614_v13, 0.0  ;;  %v4630_v61 = vld [vmem:[#allocation53_spill] sm:$0xff] }
 0x2df   : > { %1821 = vst [vmem:[%s3675_s21 + $0x210] sm:$0xff] %v1808_v7  ;;  %1847 = vst [vmem:[%s3675_s21 + $0x218] sm:$0xff] %v1834_v45  ;;  %v1912_v27 = vsel %vm3655_vm0, %v1724_v8, %v4608_v43  ;;  %v1938_v15 = vsel %vm3655_vm0, %v1724_v8, %v4609_v24  ;;  %v4617_v47 = vmax.f32 %v4616_v41, 0.0  ;;  %v4619_v31 = vmax.f32 %v4618_v6, 0.0  ;;  %v4632_v25 = vld [vmem:[#allocation59_spill] sm:$0xff]  ;;  %v4635_v57 = vld [vmem:[#allocation77_spill] sm:$0xff] }
 0x2e0   : > { %1873 = vst [vmem:[%s3675_s21 + $0x220] sm:$0xff] %v1860_v53  ;;  %1899 = vst [vmem:[%s3675_s21 + $0x228] sm:$0xff] %v1886_v21  ;;  %v1757_v30 = vsel %vm3655_vm0, %v1726_v56, %v4611_v12  ;;  %v1783_v35 = vsel %vm3655_vm0, %v1726_v56, %v4613_v0  ;;  %v1809_v18 = vsel %vm3655_vm0, %v1726_v56, %v4615_v50  ;;  %v4621_v55 = vmax.f32 %v4620_v28, 0.0  ;;  %v4639_v24 = vld [vmem:[#allocation55_spill] sm:$0xff]  ;;  %v4643_v12 = vld [vmem:[#allocation60_spill] sm:$0xff] }
 0x2e1   : > { %1925 = vst [vmem:[%s3675_s21 + $0x230] sm:$0xff] %v1912_v27  ;;  %1951 = vst [vmem:[%s3675_s21 + $0x238] sm:$0xff] %v1938_v15  ;;  %v1835_v46 = vsel %vm3655_vm0, %v1726_v56, %v4617_v47  ;;  %v1861_v58 = vsel %vm3655_vm0, %v1726_v56, %v4619_v31  ;;  %v4623_v49 = vmax.f32 %v4622_v17, 0.0  ;;  %v4625_v1 = vmax.f32 %v4624_v60, 0.0  ;;  %v4645_v0 = vld [vmem:[#allocation24_spill] sm:$0xff]  ;;  %v4647_v50 = vld [vmem:[#allocation78_spill] sm:$0xff] }
 0x2e2   : > { %1770 = vst [vmem:[%s3675_s21 + $0x240] sm:$0xff] %v1757_v30  ;;  %1796 = vst [vmem:[%s3675_s21 + $0x248] sm:$0xff] %v1783_v35  ;;  %v1887_v3 = vsel %vm3655_vm0, %v1726_v56, %v4621_v55  ;;  %v4627_v8 = vmax.f32 %v4626_v59, 0.0  ;;  %v4629_v44 = vmax.f32 %v4628_v39, 0.0  ;;  %v4631_v20 = vmax.f32 %v4630_v61, 0.0  ;;  %v4649_v47 = vld [vmem:[#allocation79_spill] sm:$0xff] }
 0x2e3   : > { %1822 = vst [vmem:[%s3675_s21 + $0x250] sm:$0xff] %v1809_v18  ;;  %1848 = vst [vmem:[%s3675_s21 + $0x258] sm:$0xff] %v1835_v46  ;;  %v1913_v4 = vsel %vm3655_vm0, %v1726_v56, %v4623_v49  ;;  %v1939_v11 = vsel %vm3655_vm0, %v1726_v56, %v4625_v1  ;;  %v1728_v19 = vpop.permute.xlu1 %1727  ;;  %v4633_v7 = vmax.f32 %v4632_v25, 0.0  ;;  %v4634_v37 = vmax.f32 %v3532_v22, 0.0  ;;  %v4641_v56 = vld [vmem:[#allocation57_spill] sm:$0xff]  ;;  %v4655_v17 = vld [vmem:[#allocation72_spill] sm:$0xff] }
 0x2e4   : > { %1874 = vst [vmem:[%s3675_s21 + $0x260] sm:$0xff] %v1861_v58  ;;  %1900 = vst [vmem:[%s3675_s21 + $0x268] sm:$0xff] %v1887_v3  ;;  %v1758_v51 = vsel %vm3655_vm0, %v1728_v19, %v4627_v8  ;;  %v1784_v2 = vsel %vm3655_vm0, %v1728_v19, %v4629_v44  ;;  %v1810_v29 = vsel %vm3655_vm0, %v1728_v19, %v4631_v20  ;;  %v4636_v23 = vmax.f32 %v4635_v57, 0.0  ;;  %v1730_v27 = vpop.permute.xlu0 %1729  ;;  %v4651_v28 = vld [vmem:[#allocation69_spill] sm:$0xff]  ;;  %v4657_v60 = vld [vmem:[#allocation27_spill] sm:$0xff] }
 0x2e5   : > { %1926 = vst [vmem:[%s3675_s21 + $0x270] sm:$0xff] %v1913_v4  ;;  %1952 = vst [vmem:[%s3675_s21 + $0x278] sm:$0xff] %v1939_v11  ;;  %v1836_v14 = vsel %vm3655_vm0, %v1728_v19, %v4633_v7  ;;  %v1862_v45 = vsel %vm3655_vm0, %v1728_v19, %v4634_v37  ;;  %v4637_v9 = vmax.f32 %v3543_v33, 0.0  ;;  %v4638_v43 = vmax.f32 %v3558_v38, 0.0 }
 0x2e6   : > { %1771 = vst [vmem:[%s3675_s21 + $0x280] sm:$0xff] %v1758_v51  ;;  %1797 = vst [vmem:[%s3675_s21 + $0x288] sm:$0xff] %v1784_v2  ;;  %v1888_v53 = vsel %vm3655_vm0, %v1728_v19, %v4636_v23  ;;  %v4640_v15 = vmax.f32 %v4639_v24, 0.0  ;;  %v4642_v62 = vmax.f32 %v4641_v56, 0.0  ;;  %v4644_v30 = vmax.f32 %v4643_v12, 0.0 }
 0x2e7   : > { %1823 = vst [vmem:[%s3675_s21 + $0x290] sm:$0xff] %v1810_v29  ;;  %1849 = vst [vmem:[%s3675_s21 + $0x298] sm:$0xff] %v1836_v14  ;;  %v1914_v21 = vsel %vm3655_vm0, %v1728_v19, %v4637_v9  ;;  %v1940_v22 = vsel %vm3655_vm0, %v1728_v19, %v4638_v43  ;;  %v4646_v35 = vmax.f32 %v4645_v0, 0.0  ;;  %v4648_v18 = vmax.f32 %v4647_v50, 0.0 }
 0x2e8   : > { %1875 = vst [vmem:[%s3675_s21 + $0x2a0] sm:$0xff] %v1862_v45  ;;  %1901 = vst [vmem:[%s3675_s21 + $0x2a8] sm:$0xff] %v1888_v53  ;;  %v1759_v33 = vsel %vm3655_vm0, %v1730_v27, %v4640_v15  ;;  %v1785_v38 = vsel %vm3655_vm0, %v1730_v27, %v4642_v62  ;;  %v1811_v40 = vsel %vm3655_vm0, %v1730_v27, %v4644_v30  ;;  %v4650_v46 = vmax.f32 %v4649_v47, 0.0 }
 0x2e9   : > { %1927 = vst [vmem:[%s3675_s21 + $0x2b0] sm:$0xff] %v1914_v21  ;;  %1953 = vst [vmem:[%s3675_s21 + $0x2b8] sm:$0xff] %v1940_v22  ;;  %v1837_v13 = vsel %vm3655_vm0, %v1730_v27, %v4646_v35  ;;  %v1863_v41 = vsel %vm3655_vm0, %v1730_v27, %v4648_v18  ;;  %v1915_v31 = vsel %vm3655_vm0, %v1730_v27, %v1567_v26  ;;  %v1732_v42 = vpop.permute.xlu1 %1731  ;;  %v4652_v55 = vmax.f32 %v4651_v28, 0.0  ;;  %v4653_v26 = vld [vmem:[#allocation70_spill] sm:$0xff] }
 0x2ea   : > { %1772 = vst [vmem:[%s3675_s21 + $0x2c0] sm:$0xff] %v1759_v33  ;;  %1798 = vst [vmem:[%s3675_s21 + $0x2c8] sm:$0xff] %v1785_v38  ;;  %v1889_v6 = vsel %vm3655_vm0, %v1730_v27, %v4650_v46  ;;  %v1941_v58 = vsel %vm3655_vm0, %v1730_v27, %v1568_v10  ;;  %v4654_v3 = vmax.f32 %v4653_v26, 0.0  ;;  %v4656_v49 = vmax.f32 %v4655_v17, 0.0 }
 0x2eb   : > { %1824 = vst [vmem:[%s3675_s21 + $0x2d0] sm:$0xff] %v1811_v40  ;;  %1850 = vst [vmem:[%s3675_s21 + $0x2d8] sm:$0xff] %v1837_v13  ;;  %v1760_v5 = vsel %vm3655_vm0, %v1732_v42, %v4652_v55  ;;  %v4658_v1 = vmax.f32 %v4657_v60, 0.0  ;;  %v1864_v19 = vsel %vm3655_vm0, %v1732_v42, %v1573_v16  ;;  %v1890_v59 = vsel %vm3655_vm0, %v1732_v42, %v1574_v54 }
 0x2ec   : > { %1876 = vst [vmem:[%s3675_s21 + $0x2e0] sm:$0xff] %v1863_v41  ;;  %1902 = vst [vmem:[%s3675_s21 + $0x2e8] sm:$0xff] %v1889_v6  ;;  %v1786_v10 = vsel %vm3655_vm0, %v1732_v42, %v4654_v3  ;;  %v1812_v4 = vsel %vm3655_vm0, %v1732_v42, %v4656_v49  ;;  %v1916_v8 = vsel %vm3655_vm0, %v1732_v42, %v1575_v34  ;;  %v4659_v51 = vmax.f32 %v3618_v63, 0.0 }
 0x2ed   : > { %1928 = vst [vmem:[%s3675_s21 + $0x2f0] sm:$0xff] %v1915_v31  ;;  %1954 = vst [vmem:[%s3675_s21 + $0x2f8] sm:$0xff] %v1941_v58  ;;  %v1838_v11 = vsel %vm3655_vm0, %v1732_v42, %v4658_v1 }
 0x2ee   : > { %1773 = vst [vmem:[%s3675_s21 + $0x300] sm:$0xff] %v1760_v5  ;;  %1799 = vst [vmem:[%s3675_s21 + $0x308] sm:$0xff] %v1786_v10  ;;  %v1942_v39 = vsel %vm3655_vm0, %v1732_v42, %v4659_v51 }
 0x2ef   : > { %1825 = vst [vmem:[%s3675_s21 + $0x310] sm:$0xff] %v1812_v4  ;;  %1851 = vst [vmem:[%s3675_s21 + $0x318] sm:$0xff] %v1838_v11 }
 0x2f0   : > { %1877 = vst [vmem:[%s3675_s21 + $0x320] sm:$0xff] %v1864_v19  ;;  %1903 = vst [vmem:[%s3675_s21 + $0x328] sm:$0xff] %v1890_v59 }
 0x2f1   : > { %1929 = vst [vmem:[%s3675_s21 + $0x330] sm:$0xff] %v1916_v8  ;;  %1955 = vst [vmem:[%s3675_s21 + $0x338] sm:$0xff] %v1942_v39 }
 0x2f2   : > { %2387 = shalt.err (!%p2384_p2)
}
 0x2f3   : > { %s2388_s24 = scalar_lea.hbm %s4162_s5, 13312  ;;  %s2392_s30 = scalar_lea.hbm %s4236_s3, 26624 }
 0x2f4   : > { %p2389_p13 = scmp.ne.s32.totalorder %s4162_s5, %s2388_s24  ;;  %p2393_p4 = scmp.lt.u32.totalorder %s4162_s5, %s4236_s3 }
 0x2f5   : > { %p2394_p5 = scmp.lt.u32.totalorder %s2392_s30, %s2388_s24  ;;  %p2396_p11 = scmp.lt.u32.totalorder %s2388_s24, %s4162_s5 }
 0x2f6   : > { %p2390_p6 = pnand %p2389_p13, %p4660_p0 }
 0x2f7   : > { %p2395_p8 = por %p2394_p5, %p2393_p4 }
 0x2f8   : > { %p2391_p10 = pneg %p2390_p6 }
 0x2f9   : > { %p2397_p1 = por %p2396_p11, %p2395_p8 }
 0x2fb   : > { %p2398_p3 = pnand %p2397_p1, %p2391_p10 }
 0x2fd   : > { %2401 = shalt.err (!%p2398_p3)
}
 0x2fe   : > { %s2456_s21 = smov 1024  }
 0x2ff   : > { %2224 = dma.vmem_to_hbm [thread:$0]  (%p4660_p0), %s4164_s27, 13312, %s4162_s5, %s1957_s8, %s2456_s21, %s2456_s21, %s2453_s18  }
 0x300 PF: > { %s1986_s26 = sand.u32 1, %s2432_s12   ;;  %p4661_p7 = scmp.ne.s32.totalorder %s4339_s19, 0 }
 0x301   : > { %p4662_p9 = scmp.ge.s32.totalorder %s2444_s15, 2  ;;  %s1987_s16 = scalar_lea.sflag [#allocation4], %s1986_s26 }
 0x303   : > { %p2238_p12 = pnand %p4662_p9, %p4661_p7 }
 0x305   : > { %2427 = dma.done.wait (!%p2238_p12), %s1987_s16, 13312  }
 0x306   : > { %2429 = vsyncadd (!%p2238_p12), %s1987_s16, 4294953984  ;;  %p17_p2 = scmp.ge.s32.totalorder %s2587_s4, 4   ;;  %s4663_s12 = smov %s2436_s13 }
 0x307   : > { %s4664_s13 = smov %s2440_s14  ;;  %s4665_s14 = smov %s2603_s7 }
 0x308   : > { %s4666_s15 = smov %s2587_s4  ;;  %19 = sbr.rel (!%p17_p2) target bundleno = 6 (0x6), region = 85 }
 0x30f   :  { %1992 = vsyncpa [#allocation3], 1 }
 0x310   :  { %1994 = vsyncpa [#allocation3 + $0x1], 1 }
 0x311   :  { %1995 = vsyncpa [#allocation6], 1 }
 0x312   :  { %1996 = vsyncpa [#allocation4], 1 }
 0x313   :  { %1998 = vsyncpa [#allocation4 + $0x1], 1 }

</bundles_post_ra>
